<compile_context>
chip_gen: v7x
topology: tpu7x:2x2x1
jax: 0.10.0
libtpu: 0.0.40
codegen_flags: <defaults>
</compile_context>

<pallas_src>
import functools
import math

import jax
import jax.numpy as jnp
from jax import lax
from jax.experimental import pallas as pl
from jax.experimental.pallas import tpu as pltpu


# ----------------------------------------------------------------------------
# Fused whole-block Pallas kernel
# ----------------------------------------------------------------------------
def _block_kernel(*refs, has_n1, has_n2, sc_mode):
    """One row-tile of the fused PerturbationBasicBlock.

    sc_mode: 'identity'  -> sc = x                      (stride 1, cin == planes)
             'conv_x'    -> sc = (x  @ Wsc)*s + b       (stride 1, cin != planes)
             'conv_xs'   -> sc = (xs @ Wsc)*s + b       (stride > 1)
    """
    it = iter(refs)
    x_ref = next(it)
    xs_ref = next(it) if sc_mode == "conv_xs" else None
    n1_ref = next(it) if has_n1 else None
    n2_ref = next(it) if has_n2 else None
    w1_ref, s1_ref, b1_ref = next(it), next(it), next(it)
    w2_ref, s2_ref, b2_ref = next(it), next(it), next(it)
    if sc_mode != "identity":
        wsc_ref, ssc_ref, bsc_ref = next(it), next(it), next(it)
    o_ref = next(it)

    x = x_ref[...]                                          # bf16 (TM, K1)
    x1 = x + n1_ref[...] if has_n1 else x                   # VPU, hides under MXU

    # conv1 + bn1 + relu
    h = jnp.dot(x1, w1_ref[...], preferred_element_type=jnp.float32)
    h = jnp.maximum(h * s1_ref[...] + b1_ref[...], 0.0)     # (TM, planes) f32

    # conv2 + bn2
    h2 = h.astype(jnp.bfloat16)                             # bf16 MXU operands
    if has_n2:
        h2 = h2 + n2_ref[...]
    y = jnp.dot(h2, w2_ref[...], preferred_element_type=jnp.float32)
    y = y * s2_ref[...] + b2_ref[...]

    # shortcut
    if sc_mode == "identity":
        sc = x.astype(jnp.float32)
    else:
        xs = xs_ref[...] if sc_mode == "conv_xs" else x
        sc = jnp.dot(xs, wsc_ref[...], preferred_element_type=jnp.float32)
        sc = sc * ssc_ref[...] + bsc_ref[...]

    o_ref[...] = jnp.maximum(y + sc, 0.0).astype(o_ref.dtype)


def _largest_divisor_tile(n, target, align):
    """Largest multiple of `align` dividing n that is <= target; else n (full)."""
    t = min(target, n)
    t -= t % align
    while t >= align:
        if n % t == 0:
            return t
        t -= align
    return n


def _row_spec(tm, k):
    return pl.BlockSpec((tm, k), lambda i: (i, 0))


def _rowmod_spec(tm, k, nb):
    # Broadcast a (hw, k) array over the batch: block row = i mod (hw // tm).
    return pl.BlockSpec((tm, k), lambda i: (i % nb, 0))


def _full_spec(a):
    zeros = (0,) * a.ndim
    return pl.BlockSpec(a.shape, lambda i: zeros)   # constant -> VMEM-resident


def _affine(v, c):
    return v.reshape(1, c).astype(jnp.float32)


def _fused_block_call(x2d, *, n1, n2, xs2d, w1, s1, b1, w2, s2, b2,
                      wsc, ssc, bsc, hw, out_dtype=jnp.bfloat16):
    """Whole basic block as one pallas_call over (M // TM,) row tiles."""
    M, K1 = x2d.shape
    planes = w1.shape[1]
    sc_mode = ("conv_xs" if xs2d is not None
               else ("conv_x" if wsc is not None else "identity"))

    # ---- row (M) tile ------------------------------------------------------
    need_mod = (n1 is not None) or (n2 is not None)
    tm = _largest_divisor_tile(hw if need_mod else M, 256, 8)
    use_mod = need_mod and M % tm == 0 and (tm % 8 == 0 or tm == M)
    if need_mod and not use_mod:
        # Rare awkward spatial shape: materialize the noise over the batch in
        # glue instead of the modular index_map.
        reps = M // hw
        if n1 is not None:
            n1 = jnp.tile(n1, (reps, 1))
        if n2 is not None:
            n2 = jnp.tile(n2, (reps, 1))
        tm = _largest_divisor_tile(M, 256, 8)
    grid = (M // tm,)
    nb = (hw // tm) if use_mod else (M // tm)

    # ---- inputs + BlockSpecs (order must match _block_kernel) --------------
    args, specs = [x2d.astype(jnp.bfloat16)], [_row_spec(tm, K1)]
    if sc_mode == "conv_xs":
        args.append(xs2d.astype(jnp.bfloat16))
        specs.append(_row_spec(tm, xs2d.shape[1]))
    if n1 is not None:
        args.append(n1.astype(jnp.bfloat16))
        specs.append(_rowmod_spec(tm, K1, nb))
    if n2 is not None:
        args.append(n2.astype(jnp.bfloat16))
        specs.append(_rowmod_spec(tm, planes, nb))

    const_args = [w1.astype(jnp.bfloat16), _affine(s1, planes), _affine(b1, planes),
                  w2.astype(jnp.bfloat16), _affine(s2, planes), _affine(b2, planes)]
    if sc_mode != "identity":
        const_args += [wsc.astype(jnp.bfloat16),
                       _affine(ssc, planes), _affine(bsc, planes)]
    for a in const_args:
        args.append(a)
        specs.append(_full_spec(a))

    kernel = functools.partial(_block_kernel, has_n1=n1 is not None,
                               has_n2=n2 is not None, sc_mode=sc_mode)
    return pl.pallas_call(
        kernel,
        grid=grid,
        in_specs=specs,
        out_specs=pl.BlockSpec((tm, planes), lambda i: (i, 0)),
        out_shape=jax.ShapeDtypeStruct((M, planes), out_dtype),
        compiler_params=pltpu.CompilerParams(
            dimension_semantics=("parallel",)),
    )(*args)


# ----------------------------------------------------------------------------
# JAX glue: im2col (only the stride>1 3x3 conv1 path needs it)
# ----------------------------------------------------------------------------
def _im2col_3x3(x, stride):
    """NHWC -> (N*Ho*Wo, 9*C) patches, tap-major (ky, kx), channels contiguous."""
    n, h, w, c = x.shape
    xp = jnp.pad(x, ((0, 0), (1, 1), (1, 1), (0, 0)))
    ho = (h - 1) // stride + 1
    wo = (w - 1) // stride + 1
    taps = []
    for ky in range(3):
        for kx in range(3):
            taps.append(xp[:, ky:ky + stride * (ho - 1) + 1:stride,
                           kx:kx + stride * (wo - 1) + 1:stride, :])
    p = jnp.concatenate(taps, axis=-1)
    return p.reshape(n * ho * wo, 9 * c), ho, wo


# ----------------------------------------------------------------------------
# PerturbationBasicBlock forward (eval mode, NHWC activations)
# ----------------------------------------------------------------------------
def perturbation_basic_block(p, x_nhwc, *, stride, noisy):
    n, h, w, cin = x_nhwc.shape
    planes = p['bn1_s'].shape[0]

    if stride > 1:
        x2d, ho, wo = _im2col_3x3(x_nhwc, stride)            # plain 3x3 conv1
        xs2d = x_nhwc[:, ::stride, ::stride, :].reshape(n * ho * wo, cin)
        n1 = None
    else:
        ho, wo = h, w
        x2d = x_nhwc.reshape(n * h * w, cin)                 # PerturbativeConv2d
        xs2d = None
        n1 = p['conv1_noise'] if noisy else None

    y2d = _fused_block_call(
        x2d, n1=n1, n2=p['conv2_noise'] if noisy else None, xs2d=xs2d,
        w1=p['conv1_w'], s1=p['bn1_s'], b1=p['bn1_b'],
        w2=p['conv2_w'], s2=p['bn2_s'], b2=p['bn2_b'],
        wsc=p.get('sc_w'), ssc=p.get('sc_s'), bsc=p.get('sc_b'),
        hw=ho * wo)
    return y2d.reshape(n, ho, wo, planes)


def perturbation_blocks_forward(blocks, x_nchw):
    """NCHW in / NCHW out, like the PyTorch module."""
    x = jnp.transpose(x_nchw, (0, 2, 3, 1)).astype(jnp.bfloat16)
    for p in blocks:
        x = perturbation_basic_block(p, x, stride=p['stride'],
                                     noisy=p['noisy_eval'])
    return jnp.transpose(x.astype(jnp.float32), (0, 3, 1, 2))


# ----------------------------------------------------------------------------
# Deterministic synthetic parameters (weight prep hoisted out of the forward)
# ----------------------------------------------------------------------------
def make_block_params(key, in_planes, planes, stride, h, w,
                      noise_level=0.1, noisy_eval=True):
    ks = iter(jax.random.split(key, 32))

    def nk():
        return next(ks)

    def bn(c):
        gamma = 1.0 + 0.1 * jax.random.normal(nk(), (c,), jnp.float32)
        beta = 0.1 * jax.random.normal(nk(), (c,), jnp.float32)
        mean = 0.1 * jax.random.normal(nk(), (c,), jnp.float32)
        var = 0.5 + jax.random.uniform(nk(), (c,), jnp.float32)
        s = gamma * jax.lax.rsqrt(var + 1e-5)
        return s, beta - mean * s

    def w_1x1(cin, cout):        # 1x1 conv weight already in (Cin, Cout) matmul layout
        return (jax.random.normal(nk(), (cin, cout), jnp.float32)
                / math.sqrt(cin)).astype(jnp.bfloat16)

    def noise_mask(hw, c):       # fixed, non-learnable uniform(-level, level) mask
        u = jax.random.uniform(nk(), (hw, c), jnp.float32)
        return (noise_level * (2.0 * u - 1.0)).astype(jnp.bfloat16)

    if stride > 1:
        ho, wo = (h - 1) // stride + 1, (w - 1) // stride + 1
    else:
        ho, wo = h, w

    p = {'stride': stride, 'noisy_eval': noisy_eval}
    if stride > 1:
        w_hwio = (jax.random.normal(nk(), (3, 3, in_planes, planes), jnp.float32)
                  / math.sqrt(9 * in_planes)).astype(jnp.bfloat16)
        p['conv1_w_hwio'] = w_hwio                              # only for the reference
        p['conv1_w'] = w_hwio.reshape(9 * in_planes, planes)    # pre-flattened, bf16
    else:
        p['conv1_w'] = w_1x1(in_planes, planes)
        p['conv1_noise'] = noise_mask(h * w, in_planes)
    p['bn1_s'], p['bn1_b'] = bn(planes)
    p['conv2_w'] = w_1x1(planes, planes)
    p['conv2_noise'] = noise_mask(ho * wo, planes)
    p['bn2_s'], p['bn2_b'] = bn(planes)
    if stride != 1 or in_planes != planes:
        p['sc_w'] = w_1x1(in_planes, planes)
        p['sc_s'], p['sc_b'] = bn(planes)
    return p


# ----------------------------------------------------------------------------
# Pure-JAX reference (same bf16-rounded parameters, f32 math)
# ----------------------------------------------------------------------------
def _ref_block(p, x_nhwc, *, stride, noisy):
    f32 = lambda a: a.astype(jnp.float32)
    n, h, w, cin = x_nhwc.shape
    if stride > 1:
        y = lax.conv_general_dilated(
            x_nhwc, f32(p['conv1_w_hwio']), (stride, stride), ((1, 1), (1, 1)),
            dimension_numbers=('NHWC', 'HWIO', 'NHWC'))
    else:
        xi = x_nhwc
        if noisy:
            xi = xi + f32(p['conv1_noise']).reshape(1, h, w, cin)
        y = jnp.einsum('nhwc,cd->nhwd', xi, f32(p['conv1_w']))
    out = jax.nn.relu(y * p['bn1_s'] + p['bn1_b'])
    _, ho, wo, planes = out.shape
    xi = out
    if noisy:
        xi = xi + f32(p['conv2_noise']).reshape(1, ho, wo, planes)
    y2 = jnp.einsum('nhwc,cd->nhwd', xi, f32(p['conv2_w'])) * p['bn2_s'] + p['bn2_b']
    if 'sc_w' in p:
        xs = x_nhwc[:, ::stride, ::stride, :]
        sc = (jnp.einsum('nhwc,cd->nhwd', xs, f32(p['sc_w']))
              * p['sc_s'] + p['sc_b'])
    else:
        sc = x_nhwc
    return jax.nn.relu(y2 + sc)


# ----------------------------------------------------------------------------
if __name__ == "__main__":
    key = jax.random.PRNGKey(0)
    k1, k2, kx = jax.random.split(key, 3)

    N, C, H, W = 2, 32, 16, 16
    x_nchw = jax.random.normal(kx, (N, C, H, W), jnp.float32)   # NCHW, like PyTorch

    # Two stacked blocks exercise every code path:
    #   block 1: stride=1 -> PerturbativeConv2d conv1, identity shortcut
    #   block 2: stride=2 -> plain 3x3 stride-2 conv1, 1x1 downsample shortcut
    blocks = [
        make_block_params(k1, 32, 32, stride=1, h=H, w=W, noisy_eval=True),
        make_block_params(k2, 32, 64, stride=2, h=H, w=W, noisy_eval=True),
    ]

    fwd = jax.jit(functools.partial(perturbation_blocks_forward, blocks))
    out = fwd(x_nchw)
    jax.block_until_ready(out)
    assert out.shape == (N, 64, H // 2, W // 2) and out.dtype == jnp.float32

    # pure-JAX reference check (bf16-rounded inputs/params, f32 math)
    xr = jnp.transpose(x_nchw, (0, 2, 3, 1)).astype(jnp.bfloat16).astype(jnp.float32)
    xr = _ref_block(blocks[0], xr, stride=1, noisy=True)
    xr = _ref_block(blocks[1], xr, stride=2, noisy=True)
    ref = jnp.transpose(xr, (0, 3, 1, 2))
    err = float(jnp.max(jnp.abs(out - ref)))
    tol = 0.05 * (float(jnp.max(jnp.abs(ref))) + 1.0)   # bf16 storage tolerance
    assert err <= tol, f"max abs err {err} > {tol}"

    print("KERNEL_OK")
</pallas_src>

<mosaic_0001>
module attributes {stable_mosaic.version = 11 : i64} {
  func.func @_block_kernel(%arg0: i32, %arg1: memref<256x32xbf16, #tpu.memory_space<vmem>>, %arg2: memref<256x32xbf16, #tpu.memory_space<vmem>>, %arg3: memref<256x32xbf16, #tpu.memory_space<vmem>>, %arg4: memref<32x32xbf16, #tpu.memory_space<vmem>>, %arg5: memref<1x32xf32, #tpu.memory_space<vmem>>, %arg6: memref<1x32xf32, #tpu.memory_space<vmem>>, %arg7: memref<32x32xbf16, #tpu.memory_space<vmem>>, %arg8: memref<1x32xf32, #tpu.memory_space<vmem>>, %arg9: memref<1x32xf32, #tpu.memory_space<vmem>>, %arg10: memref<256x32xbf16, #tpu.memory_space<vmem>>) attributes {dimension_semantics = [#tpu.dimension_semantics<parallel>], iteration_bounds = array<i64: 2>, scalar_prefetch = 0 : i64, scratch_operands = 0 : i64, tpu.core_type = #tpu.core_type<tc>, window_params = [{transform_indices = @transform_0, window_bounds = array<i64: 256, 32>}, {transform_indices = @transform_1, window_bounds = array<i64: 256, 32>}, {transform_indices = @transform_2, window_bounds = array<i64: 256, 32>}, {pipeline_mode = #tpu.pipeline_mode<synchronous>, transform_indices = @transform_3, window_bounds = array<i64: 32, 32>}, {pipeline_mode = #tpu.pipeline_mode<synchronous>, transform_indices = @transform_4, window_bounds = array<i64: 1, 32>}, {pipeline_mode = #tpu.pipeline_mode<synchronous>, transform_indices = @transform_5, window_bounds = array<i64: 1, 32>}, {pipeline_mode = #tpu.pipeline_mode<synchronous>, transform_indices = @transform_6, window_bounds = array<i64: 32, 32>}, {pipeline_mode = #tpu.pipeline_mode<synchronous>, transform_indices = @transform_7, window_bounds = array<i64: 1, 32>}, {pipeline_mode = #tpu.pipeline_mode<synchronous>, transform_indices = @transform_8, window_bounds = array<i64: 1, 32>}, {transform_indices = @transform_9, window_bounds = array<i64: 256, 32>}]} {
    %c0 = arith.constant 0 : index
    %c0_0 = arith.constant 0 : index
    %0 = vector.load %arg1[%c0, %c0_0] : memref<256x32xbf16, #tpu.memory_space<vmem>>, vector<256x32xbf16>
    %c0_1 = arith.constant 0 : index
    %c0_2 = arith.constant 0 : index
    %1 = vector.load %arg2[%c0_1, %c0_2] : memref<256x32xbf16, #tpu.memory_space<vmem>>, vector<256x32xbf16>
    %2 = arith.addf %0, %1 : vector<256x32xbf16>
    %c0_3 = arith.constant 0 : index
    %c0_4 = arith.constant 0 : index
    %3 = vector.load %arg4[%c0_3, %c0_4] : memref<32x32xbf16, #tpu.memory_space<vmem>>, vector<32x32xbf16>
    %cst = arith.constant dense<0.000000e+00> : vector<256x32xf32>
    %4 = tpu.matmul %2, %3, %cst {dimension_numbers = #tpu.dot_dimension_numbers<[1], [0], [0], [1], [0, 0, 1, 1], [], []>} : vector<256x32xbf16>, vector<32x32xbf16>, vector<256x32xf32> -> vector<256x32xf32>
    %c0_5 = arith.constant 0 : index
    %c0_6 = arith.constant 0 : index
    %5 = vector.load %arg5[%c0_5, %c0_6] : memref<1x32xf32, #tpu.memory_space<vmem>>, vector<1x32xf32>
    %6 = vector.broadcast %5 : vector<1x32xf32> to vector<256x32xf32>
    %7 = arith.mulf %4, %6 : vector<256x32xf32>
    %c0_7 = arith.constant 0 : index
    %c0_8 = arith.constant 0 : index
    %8 = vector.load %arg6[%c0_7, %c0_8] : memref<1x32xf32, #tpu.memory_space<vmem>>, vector<1x32xf32>
    %9 = vector.broadcast %8 : vector<1x32xf32> to vector<256x32xf32>
    %10 = arith.addf %7, %9 : vector<256x32xf32>
    %cst_9 = arith.constant 0.000000e+00 : f32
    %11 = vector.broadcast %cst_9 : f32 to vector<256x32xf32>
    %12 = arith.maximumf %10, %11 : vector<256x32xf32>
    %13 = arith.truncf %12 : vector<256x32xf32> to vector<256x32xbf16>
    %c0_10 = arith.constant 0 : index
    %c0_11 = arith.constant 0 : index
    %14 = vector.load %arg3[%c0_10, %c0_11] : memref<256x32xbf16, #tpu.memory_space<vmem>>, vector<256x32xbf16>
    %15 = arith.addf %13, %14 : vector<256x32xbf16>
    %c0_12 = arith.constant 0 : index
    %c0_13 = arith.constant 0 : index
    %16 = vector.load %arg7[%c0_12, %c0_13] : memref<32x32xbf16, #tpu.memory_space<vmem>>, vector<32x32xbf16>
    %cst_14 = arith.constant dense<0.000000e+00> : vector<256x32xf32>
    %17 = tpu.matmul %15, %16, %cst_14 {dimension_numbers = #tpu.dot_dimension_numbers<[1], [0], [0], [1], [0, 0, 1, 1], [], []>} : vector<256x32xbf16>, vector<32x32xbf16>, vector<256x32xf32> -> vector<256x32xf32>
    %c0_15 = arith.constant 0 : index
    %c0_16 = arith.constant 0 : index
    %18 = vector.load %arg8[%c0_15, %c0_16] : memref<1x32xf32, #tpu.memory_space<vmem>>, vector<1x32xf32>
    %19 = vector.broadcast %18 : vector<1x32xf32> to vector<256x32xf32>
    %20 = arith.mulf %17, %19 : vector<256x32xf32>
    %c0_17 = arith.constant 0 : index
    %c0_18 = arith.constant 0 : index
    %21 = vector.load %arg9[%c0_17, %c0_18] : memref<1x32xf32, #tpu.memory_space<vmem>>, vector<1x32xf32>
    %22 = vector.broadcast %21 : vector<1x32xf32> to vector<256x32xf32>
    %23 = arith.addf %20, %22 : vector<256x32xf32>
    %24 = arith.extf %0 : vector<256x32xbf16> to vector<256x32xf32>
    %25 = arith.addf %23, %24 : vector<256x32xf32>
    %cst_19 = arith.constant 0.000000e+00 : f32
    %26 = vector.broadcast %cst_19 : f32 to vector<256x32xf32>
    %27 = arith.maximumf %25, %26 : vector<256x32xf32>
    %28 = arith.truncf %27 : vector<256x32xf32> to vector<256x32xbf16>
    %c0_20 = arith.constant 0 : index
    %c0_21 = arith.constant 0 : index
    %29 = vector.load %arg10[%c0_20, %c0_21] : memref<256x32xbf16, #tpu.memory_space<vmem>>, vector<256x32xbf16>
    tpu.vector_store %arg10[%c0_20, %c0_21], %28 {strides = array<i32>} : memref<256x32xbf16, #tpu.memory_space<vmem>>, vector<256x32xbf16>,
    return
  }
  func.func @transform_0(%arg0: i32) -> (i32, i32) {
    %c0_i32 = arith.constant 0 : i32
    %c0_i32_0 = arith.constant 0 : i32
    return %arg0, %c0_i32 : i32, i32
  }
  func.func @transform_1(%arg0: i32) -> (i32, i32) {
    %c1_i32 = arith.constant 1 : i32
    %c0_i32 = arith.constant 0 : i32
    %0 = arith.cmpi eq, %c1_i32, %c0_i32 : i32
    %c1_i32_0 = arith.constant 1 : i32
    %1 = arith.select %0, %c1_i32_0, %c1_i32 : i32
    %2 = arith.remsi %arg0, %1 : i32
    %c0_i32_1 = arith.constant 0 : i32
    %3 = arith.cmpi ne, %2, %c0_i32_1 : i32
    %c0_i32_2 = arith.constant 0 : i32
    %4 = arith.cmpi slt, %2, %c0_i32_2 : i32
    %c0_i32_3 = arith.constant 0 : i32
    %5 = arith.cmpi slt, %1, %c0_i32_3 : i32
    %6 = arith.xori %4, %5 : i1
    %7 = arith.andi %6, %3 : i1
    %8 = arith.addi %2, %1 : i32
    %9 = arith.select %7, %8, %2 : i32
    %c0_i32_4 = arith.constant 0 : i32
    %c0_i32_5 = arith.constant 0 : i32
    return %9, %c0_i32_4 : i32, i32
  }
  func.func @transform_2(%arg0: i32) -> (i32, i32) {
    %c1_i32 = arith.constant 1 : i32
    %c0_i32 = arith.constant 0 : i32
    %0 = arith.cmpi eq, %c1_i32, %c0_i32 : i32
    %c1_i32_0 = arith.constant 1 : i32
    %1 = arith.select %0, %c1_i32_0, %c1_i32 : i32
    %2 = arith.remsi %arg0, %1 : i32
    %c0_i32_1 = arith.constant 0 : i32
    %3 = arith.cmpi ne, %2, %c0_i32_1 : i32
    %c0_i32_2 = arith.constant 0 : i32
    %4 = arith.cmpi slt, %2, %c0_i32_2 : i32
    %c0_i32_3 = arith.constant 0 : i32
    %5 = arith.cmpi slt, %1, %c0_i32_3 : i32
    %6 = arith.xori %4, %5 : i1
    %7 = arith.andi %6, %3 : i1
    %8 = arith.addi %2, %1 : i32
    %9 = arith.select %7, %8, %2 : i32
    %c0_i32_4 = arith.constant 0 : i32
    %c0_i32_5 = arith.constant 0 : i32
    return %9, %c0_i32_4 : i32, i32
  }
  func.func @transform_3(%arg0: i32) -> (i32, i32) {
    %c0_i32 = arith.constant 0 : i32
    %c0_i32_0 = arith.constant 0 : i32
    %c0_i32_1 = arith.constant 0 : i32
    return %c0_i32, %c0_i32_0 : i32, i32
  }
  func.func @transform_4(%arg0: i32) -> (i32, i32) {
    %c0_i32 = arith.constant 0 : i32
    %c0_i32_0 = arith.constant 0 : i32
    %c0_i32_1 = arith.constant 0 : i32
    return %c0_i32, %c0_i32_0 : i32, i32
  }
  func.func @transform_5(%arg0: i32) -> (i32, i32) {
    %c0_i32 = arith.constant 0 : i32
    %c0_i32_0 = arith.constant 0 : i32
    %c0_i32_1 = arith.constant 0 : i32
    return %c0_i32, %c0_i32_0 : i32, i32
  }
  func.func @transform_6(%arg0: i32) -> (i32, i32) {
    %c0_i32 = arith.constant 0 : i32
    %c0_i32_0 = arith.constant 0 : i32
    %c0_i32_1 = arith.constant 0 : i32
    return %c0_i32, %c0_i32_0 : i32, i32
  }
  func.func @transform_7(%arg0: i32) -> (i32, i32) {
    %c0_i32 = arith.constant 0 : i32
    %c0_i32_0 = arith.constant 0 : i32
    %c0_i32_1 = arith.constant 0 : i32
    return %c0_i32, %c0_i32_0 : i32, i32
  }
  func.func @transform_8(%arg0: i32) -> (i32, i32) {
    %c0_i32 = arith.constant 0 : i32
    %c0_i32_0 = arith.constant 0 : i32
    %c0_i32_1 = arith.constant 0 : i32
    return %c0_i32, %c0_i32_0 : i32, i32
  }
  func.func @transform_9(%arg0: i32) -> (i32, i32) {
    %c0_i32 = arith.constant 0 : i32
    %c0_i32_0 = arith.constant 0 : i32
    return %arg0, %c0_i32 : i32, i32
  }
}

module attributes {stable_mosaic.version = 11 : i64} {
  func.func @_block_kernel(%arg0: i32, %arg1: memref<64x288xbf16, #tpu.memory_space<vmem>>, %arg2: memref<64x32xbf16, #tpu.memory_space<vmem>>, %arg3: memref<64x64xbf16, #tpu.memory_space<vmem>>, %arg4: memref<288x64xbf16, #tpu.memory_space<vmem>>, %arg5: memref<1x64xf32, #tpu.memory_space<vmem>>, %arg6: memref<1x64xf32, #tpu.memory_space<vmem>>, %arg7: memref<64x64xbf16, #tpu.memory_space<vmem>>, %arg8: memref<1x64xf32, #tpu.memory_space<vmem>>, %arg9: memref<1x64xf32, #tpu.memory_space<vmem>>, %arg10: memref<32x64xbf16, #tpu.memory_space<vmem>>, %arg11: memref<1x64xf32, #tpu.memory_space<vmem>>, %arg12: memref<1x64xf32, #tpu.memory_space<vmem>>, %arg13: memref<64x64xbf16, #tpu.memory_space<vmem>>) attributes {dimension_semantics = [#tpu.dimension_semantics<parallel>], iteration_bounds = array<i64: 2>, scalar_prefetch = 0 : i64, scratch_operands = 0 : i64, tpu.core_type = #tpu.core_type<tc>, window_params = [{transform_indices = @transform_0, window_bounds = array<i64: 64, 288>}, {transform_indices = @transform_1, window_bounds = array<i64: 64, 32>}, {transform_indices = @transform_2, window_bounds = array<i64: 64, 64>}, {pipeline_mode = #tpu.pipeline_mode<synchronous>, transform_indices = @transform_3, window_bounds = array<i64: 288, 64>}, {pipeline_mode = #tpu.pipeline_mode<synchronous>, transform_indices = @transform_4, window_bounds = array<i64: 1, 64>}, {pipeline_mode = #tpu.pipeline_mode<synchronous>, transform_indices = @transform_5, window_bounds = array<i64: 1, 64>}, {pipeline_mode = #tpu.pipeline_mode<synchronous>, transform_indices = @transform_6, window_bounds = array<i64: 64, 64>}, {pipeline_mode = #tpu.pipeline_mode<synchronous>, transform_indices = @transform_7, window_bounds = array<i64: 1, 64>}, {pipeline_mode = #tpu.pipeline_mode<synchronous>, transform_indices = @transform_8, window_bounds = array<i64: 1, 64>}, {pipeline_mode = #tpu.pipeline_mode<synchronous>, transform_indices = @transform_9, window_bounds = array<i64: 32, 64>}, {pipeline_mode = #tpu.pipeline_mode<synchronous>, transform_indices = @transform_10, window_bounds = array<i64: 1, 64>}, {pipeline_mode = #tpu.pipeline_mode<synchronous>, transform_indices = @transform_11, window_bounds = array<i64: 1, 64>}, {transform_indices = @transform_12, window_bounds = array<i64: 64, 64>}]} {
    %c0 = arith.constant 0 : index
    %c0_0 = arith.constant 0 : index
    %0 = vector.load %arg1[%c0, %c0_0] : memref<64x288xbf16, #tpu.memory_space<vmem>>, vector<64x288xbf16>
    %c0_1 = arith.constant 0 : index
    %c0_2 = arith.constant 0 : index
    %1 = vector.load %arg4[%c0_1, %c0_2] : memref<288x64xbf16, #tpu.memory_space<vmem>>, vector<288x64xbf16>
    %cst = arith.constant dense<0.000000e+00> : vector<64x64xf32>
    %2 = tpu.matmul %0, %1, %cst {dimension_numbers = #tpu.dot_dimension_numbers<[1], [0], [0], [1], [0, 0, 1, 1], [], []>} : vector<64x288xbf16>, vector<288x64xbf16>, vector<64x64xf32> -> vector<64x64xf32>
    %c0_3 = arith.constant 0 : index
    %c0_4 = arith.constant 0 : index
    %3 = vector.load %arg5[%c0_3, %c0_4] : memref<1x64xf32, #tpu.memory_space<vmem>>, vector<1x64xf32>
    %4 = vector.broadcast %3 : vector<1x64xf32> to vector<64x64xf32>
    %5 = arith.mulf %2, %4 : vector<64x64xf32>
    %c0_5 = arith.constant 0 : index
    %c0_6 = arith.constant 0 : index
    %6 = vector.load %arg6[%c0_5, %c0_6] : memref<1x64xf32, #tpu.memory_space<vmem>>, vector<1x64xf32>
    %7 = vector.broadcast %6 : vector<1x64xf32> to vector<64x64xf32>
    %8 = arith.addf %5, %7 : vector<64x64xf32>
    %cst_7 = arith.constant 0.000000e+00 : f32
    %9 = vector.broadcast %cst_7 : f32 to vector<64x64xf32>
    %10 = arith.maximumf %8, %9 : vector<64x64xf32>
    %11 = arith.truncf %10 : vector<64x64xf32> to vector<64x64xbf16>
    %c0_8 = arith.constant 0 : index
    %c0_9 = arith.constant 0 : index
    %12 = vector.load %arg3[%c0_8, %c0_9] : memref<64x64xbf16, #tpu.memory_space<vmem>>, vector<64x64xbf16>
    %13 = arith.addf %11, %12 : vector<64x64xbf16>
    %c0_10 = arith.constant 0 : index
    %c0_11 = arith.constant 0 : index
    %14 = vector.load %arg7[%c0_10, %c0_11] : memref<64x64xbf16, #tpu.memory_space<vmem>>, vector<64x64xbf16>
    %cst_12 = arith.constant dense<0.000000e+00> : vector<64x64xf32>
    %15 = tpu.matmul %13, %14, %cst_12 {dimension_numbers = #tpu.dot_dimension_numbers<[1], [0], [0], [1], [0, 0, 1, 1], [], []>} : vector<64x64xbf16>, vector<64x64xbf16>, vector<64x64xf32> -> vector<64x64xf32>
    %c0_13 = arith.constant 0 : index
    %c0_14 = arith.constant 0 : index
    %16 = vector.load %arg8[%c0_13, %c0_14] : memref<1x64xf32, #tpu.memory_space<vmem>>, vector<1x64xf32>
    %17 = vector.broadcast %16 : vector<1x64xf32> to vector<64x64xf32>
    %18 = arith.mulf %15, %17 : vector<64x64xf32>
    %c0_15 = arith.constant 0 : index
    %c0_16 = arith.constant 0 : index
    %19 = vector.load %arg9[%c0_15, %c0_16] : memref<1x64xf32, #tpu.memory_space<vmem>>, vector<1x64xf32>
    %20 = vector.broadcast %19 : vector<1x64xf32> to vector<64x64xf32>
    %21 = arith.addf %18, %20 : vector<64x64xf32>
    %c0_17 = arith.constant 0 : index
    %c0_18 = arith.constant 0 : index
    %22 = vector.load %arg2[%c0_17, %c0_18] : memref<64x32xbf16, #tpu.memory_space<vmem>>, vector<64x32xbf16>
    %c0_19 = arith.constant 0 : index
    %c0_20 = arith.constant 0 : index
    %23 = vector.load %arg10[%c0_19, %c0_20] : memref<32x64xbf16, #tpu.memory_space<vmem>>, vector<32x64xbf16>
    %cst_21 = arith.constant dense<0.000000e+00> : vector<64x64xf32>
    %24 = tpu.matmul %22, %23, %cst_21 {dimension_numbers = #tpu.dot_dimension_numbers<[1], [0], [0], [1], [0, 0, 1, 1], [], []>} : vector<64x32xbf16>, vector<32x64xbf16>, vector<64x64xf32> -> vector<64x64xf32>
    %c0_22 = arith.constant 0 : index
    %c0_23 = arith.constant 0 : index
    %25 = vector.load %arg11[%c0_22, %c0_23] : memref<1x64xf32, #tpu.memory_space<vmem>>, vector<1x64xf32>
    %26 = vector.broadcast %25 : vector<1x64xf32> to vector<64x64xf32>
    %27 = arith.mulf %24, %26 : vector<64x64xf32>
    %c0_24 = arith.constant 0 : index
    %c0_25 = arith.constant 0 : index
    %28 = vector.load %arg12[%c0_24, %c0_25] : memref<1x64xf32, #tpu.memory_space<vmem>>, vector<1x64xf32>
    %29 = vector.broadcast %28 : vector<1x64xf32> to vector<64x64xf32>
    %30 = arith.addf %27, %29 : vector<64x64xf32>
    %31 = arith.addf %21, %30 : vector<64x64xf32>
    %cst_26 = arith.constant 0.000000e+00 : f32
    %32 = vector.broadcast %cst_26 : f32 to vector<64x64xf32>
    %33 = arith.maximumf %31, %32 : vector<64x64xf32>
    %34 = arith.truncf %33 : vector<64x64xf32> to vector<64x64xbf16>
    %c0_27 = arith.constant 0 : index
    %c0_28 = arith.constant 0 : index
    %35 = vector.load %arg13[%c0_27, %c0_28] : memref<64x64xbf16, #tpu.memory_space<vmem>>, vector<64x64xbf16>
    tpu.vector_store %arg13[%c0_27, %c0_28], %34 {strides = array<i32>} : memref<64x64xbf16, #tpu.memory_space<vmem>>, vector<64x64xbf16>,
    return
  }
  func.func @transform_0(%arg0: i32) -> (i32, i32) {
    %c0_i32 = arith.constant 0 : i32
    %c0_i32_0 = arith.constant 0 : i32
    return %arg0, %c0_i32 : i32, i32
  }
  func.func @transform_1(%arg0: i32) -> (i32, i32) {
    %c0_i32 = arith.constant 0 : i32
    %c0_i32_0 = arith.constant 0 : i32
    return %arg0, %c0_i32 : i32, i32
  }
  func.func @transform_2(%arg0: i32) -> (i32, i32) {
    %c1_i32 = arith.constant 1 : i32
    %c0_i32 = arith.constant 0 : i32
    %0 = arith.cmpi eq, %c1_i32, %c0_i32 : i32
    %c1_i32_0 = arith.constant 1 : i32
    %1 = arith.select %0, %c1_i32_0, %c1_i32 : i32
    %2 = arith.remsi %arg0, %1 : i32
    %c0_i32_1 = arith.constant 0 : i32
    %3 = arith.cmpi ne, %2, %c0_i32_1 : i32
    %c0_i32_2 = arith.constant 0 : i32
    %4 = arith.cmpi slt, %2, %c0_i32_2 : i32
    %c0_i32_3 = arith.constant 0 : i32
    %5 = arith.cmpi slt, %1, %c0_i32_3 : i32
    %6 = arith.xori %4, %5 : i1
    %7 = arith.andi %6, %3 : i1
    %8 = arith.addi %2, %1 : i32
    %9 = arith.select %7, %8, %2 : i32
    %c0_i32_4 = arith.constant 0 : i32
    %c0_i32_5 = arith.constant 0 : i32
    return %9, %c0_i32_4 : i32, i32
  }
  func.func @transform_3(%arg0: i32) -> (i32, i32) {
    %c0_i32 = arith.constant 0 : i32
    %c0_i32_0 = arith.constant 0 : i32
    %c0_i32_1 = arith.constant 0 : i32
    return %c0_i32, %c0_i32_0 : i32, i32
  }
  func.func @transform_4(%arg0: i32) -> (i32, i32) {
    %c0_i32 = arith.constant 0 : i32
    %c0_i32_0 = arith.constant 0 : i32
    %c0_i32_1 = arith.constant 0 : i32
    return %c0_i32, %c0_i32_0 : i32, i32
  }
  func.func @transform_5(%arg0: i32) -> (i32, i32) {
    %c0_i32 = arith.constant 0 : i32
    %c0_i32_0 = arith.constant 0 : i32
    %c0_i32_1 = arith.constant 0 : i32
    return %c0_i32, %c0_i32_0 : i32, i32
  }
  func.func @transform_6(%arg0: i32) -> (i32, i32) {
    %c0_i32 = arith.constant 0 : i32
    %c0_i32_0 = arith.constant 0 : i32
    %c0_i32_1 = arith.constant 0 : i32
    return %c0_i32, %c0_i32_0 : i32, i32
  }
  func.func @transform_7(%arg0: i32) -> (i32, i32) {
    %c0_i32 = arith.constant 0 : i32
    %c0_i32_0 = arith.constant 0 : i32
    %c0_i32_1 = arith.constant 0 : i32
    return %c0_i32, %c0_i32_0 : i32, i32
  }
  func.func @transform_8(%arg0: i32) -> (i32, i32) {
    %c0_i32 = arith.constant 0 : i32
    %c0_i32_0 = arith.constant 0 : i32
    %c0_i32_1 = arith.constant 0 : i32
    return %c0_i32, %c0_i32_0 : i32, i32
  }
  func.func @transform_9(%arg0: i32) -> (i32, i32) {
    %c0_i32 = arith.constant 0 : i32
    %c0_i32_0 = arith.constant 0 : i32
    %c0_i32_1 = arith.constant 0 : i32
    return %c0_i32, %c0_i32_0 : i32, i32
  }
  func.func @transform_10(%arg0: i32) -> (i32, i32) {
    %c0_i32 = arith.constant 0 : i32
    %c0_i32_0 = arith.constant 0 : i32
    %c0_i32_1 = arith.constant 0 : i32
    return %c0_i32, %c0_i32_0 : i32, i32
  }
  func.func @transform_11(%arg0: i32) -> (i32, i32) {
    %c0_i32 = arith.constant 0 : i32
    %c0_i32_0 = arith.constant 0 : i32
    %c0_i32_1 = arith.constant 0 : i32
    return %c0_i32, %c0_i32_0 : i32, i32
  }
  func.func @transform_12(%arg0: i32) -> (i32, i32) {
    %c0_i32 = arith.constant 0 : i32
    %c0_i32_0 = arith.constant 0 : i32
    return %arg0, %c0_i32 : i32, i32
  }
}

</mosaic_0001>

<bundles_post_ra>
// kernel: perturbation_blocks_forward.2
= control target key start
LH: loop header
LB: loop body
LE: loop exit
PB: predicated region body
PF: predicated region fallthrough
CT: control target
= control target key end

     0   :  { %s1966_s30 = smov 0   ;;  %s2554_s0 = inlined_call_operand.vmem [shape: bf16[512,32], index: 0, kind: input, shape index: {}]   ;;  %s2555_s1 = inlined_call_operand.vmem [shape: bf16[256,32], index: 1, kind: input, shape index: {}]   ;;  %s2556_s2 = inlined_call_operand.vmem [shape: bf16[256,32], index: 2, kind: input, shape index: {}]   ;;  %s2557_s3 = inlined_call_operand.vmem [shape: bf16[32,32], index: 3, kind: input, shape index: {}]   ;;  %s2558_s4 = inlined_call_operand.vmem [shape: f32[1,32], index: 4, kind: input, shape index: {}]   ;;  %s2559_s5 = inlined_call_operand.vmem [shape: f32[1,32], index: 5, kind: input, shape index: {}]   ;;  %s2560_s6 = inlined_call_operand.vmem [shape: bf16[32,32], index: 6, kind: input, shape index: {}]   ;;  %s2561_s7 = inlined_call_operand.vmem [shape: f32[1,32], index: 7, kind: input, shape index: {}]   ;;  %s2562_s8 = inlined_call_operand.vmem [shape: f32[1,32], index: 8, kind: input, shape index: {}]   ;;  %s2563_s9 = inlined_call_operand.vmem [shape: bf16[512,32], index: 9, kind: output, shape index: {}]  }
   0x1 LB: > { %s1625_s10 = sadd.s32 4294967295, %s1914_s30   ;;  %p1629_p0 = scmp.ge.s32.totalorder %s1914_s30, 1  ;;  %s1914_s30 = sphi %s1966_s30, %s19_s30  }
   0x2   : > { %p288_p1 = scmp.lt.s32.totalorder %s1914_s30, 3 }
   0x4   : > { %p289_p2 = pnand %p1629_p0, %p288_p1 }
   0x5   : > { %v1888_v0 = vld [vmem:[%s2557_s3] sm:$0xff] (!%p289_p2)   ;;  %s1630_s13 = sshll.u32 (!%p289_p2), %s1625_s10, 5  ;;  %v1889_v1 = vld [vmem:[%s2557_s3 + $0x8] sm:$0xff] (!%p289_p2)   ;;  %vm529_vm0 = vcmask (!%p289_p2), 261120   ;;  %v373_v6 = vld [vmem:[%s2555_s1 + $0x10] sm:$0xf] (!%p289_p2) }
   0x6   : > { %292 = sbr.rel (%p289_p2) target bundleno = 530 (0x212), region = 56  ;;  %p325_p3 = scmp.lt.s32.totalorder (!%p289_p2), %s1630_s13, 63  ;;  %1808 = vmatprep.subr.bf16.mxu0 (!%p289_p2), %v1888_v0  ;;  %v369_v2 = vld [vmem:[%s2555_s1] sm:$0xf] (!%p289_p2)  ;;  %v370_v3 = vld [vmem:[%s2555_s1 + $0x4] sm:$0xf] (!%p289_p2) }
   0x7   : > { %1809 = vmatpush3.bf16.msra.mxu0 (!%p289_p2), %v1888_v0  ;;  %v371_v4 = vld [vmem:[%s2555_s1 + $0x8] sm:$0xf] (!%p289_p2)  ;;  %v372_v5 = vld [vmem:[%s2555_s1 + $0xc] sm:$0xf] (!%p289_p2)  ;;  %v374_v7 = vld [vmem:[%s2555_s1 + $0x14] sm:$0xf] (!%p289_p2) }
   0x8   : > { %1810 = vmatprep.subr.bf16.mxu0 (!%p289_p2), %v1889_v1  ;;  %v375_v20 = vld [vmem:[%s2555_s1 + $0x18] sm:$0xf] (!%p289_p2)  ;;  %v376_v21 = vld [vmem:[%s2555_s1 + $0x1c] sm:$0xf] (!%p289_p2)  ;;  %v377_v25 = vld [vmem:[%s2555_s1 + $0x20] sm:$0xf] (!%p289_p2) }
   0x9   : > { %v378_v30 = vld [vmem:[%s2555_s1 + $0x24] sm:$0xf] (!%p289_p2)  ;;  %v379_v36 = vld [vmem:[%s2555_s1 + $0x28] sm:$0xf] (!%p289_p2)  ;;  %v380_v37 = vld [vmem:[%s2555_s1 + $0x2c] sm:$0xf] (!%p289_p2) }
   0xa   : > { %v381_v43 = vld [vmem:[%s2555_s1 + $0x30] sm:$0xf] (!%p289_p2)  ;;  %v382_v44 = vld [vmem:[%s2555_s1 + $0x34] sm:$0xf] (!%p289_p2)  ;;  %v383_v51 = vld [vmem:[%s2555_s1 + $0x38] sm:$0xf] (!%p289_p2) }
   0xb   : > { %1811 = vmatpush3.bf16.msra.mxu0 (!%p289_p2), %v1889_v1  ;;  %v384_v52 = vld [vmem:[%s2555_s1 + $0x3c] sm:$0xf] (!%p289_p2)  ;;  %v385_v56 = vld [vmem:[%s2555_s1 + $0x40] sm:$0xf] (!%p289_p2)  ;;  %v386_v57 = vld [vmem:[%s2555_s1 + $0x44] sm:$0xf] (!%p289_p2) }
   0xc   : > { %v387_v1 = vld [vmem:[%s2555_s1 + $0x48] sm:$0xf] (!%p289_p2)  ;;  %vm1536_vm1 = vcmask (!%p289_p2), 257024  }
   0xd   : > { %s2565_s13 = smov (!%p325_p3, %s1630_s13), 63 }
   0xe   : > { %s1631_s18 = sshll.u32 %s2565_s13, 2 }
   0xf   : > { %s1997_s25 = scalar_lea.vmem %s2554_s0, %s1631_s18  ;;  %s2401_s24 = scalar_lea.vmem %s2563_s9, %s1631_s18 }
  0x10   : > { %v2009_v8 = vld [vmem:[%s1997_s25] sm:$0xf]  ;;  %v2012_v9 = vld [vmem:[%s1997_s25 + $0x4] sm:$0xf]  ;;  %v2015_v10 = vld [vmem:[%s1997_s25 + $0x8] sm:$0xf] }
  0x11   : > { %v401_v11 = vadd.bf16 %v369_v2, %v2009_v8  ;;  %v402_v12 = vadd.bf16 %v370_v3, %v2012_v9  ;;  %v2020_v13 = vld [vmem:[%s1997_s25 + $0xc] sm:$0xf]  ;;  %v2023_v14 = vld [vmem:[%s1997_s25 + $0x10] sm:$0xf]  ;;  %v2026_v15 = vld [vmem:[%s1997_s25 + $0x14] sm:$0xf]  ;;  %v403_v16 = vadd.bf16 %v371_v4, %v2015_v10 }
  0x12   : > { %v404_v17 = vadd.bf16 %v372_v5, %v2020_v13  ;;  %v405_v18 = vadd.bf16 %v373_v6, %v2023_v14  ;;  %v406_v19 = vadd.bf16 %v374_v7, %v2026_v15  ;;  %v2039_v23 = vld [vmem:[%s1997_s25 + $0x18] sm:$0xf]  ;;  %v2042_v24 = vld [vmem:[%s1997_s25 + $0x1c] sm:$0xf]  ;;  %v2048_v28 = vld [vmem:[%s1997_s25 + $0x20] sm:$0xf] }
  0x13   : > { %v1634_v22 = vcombine.low %v401_v11, %v402_v12  ;;  %v2051_v29 = vld [vmem:[%s1997_s25 + $0x24] sm:$0xf]  ;;  %v407_v31 = vadd.bf16 %v375_v20, %v2039_v23  ;;  %v408_v32 = vadd.bf16 %v376_v21, %v2042_v24  ;;  %v409_v33 = vadd.bf16 %v377_v25, %v2048_v28  ;;  %v2070_v39 = vld [vmem:[%s1997_s25 + $0x28] sm:$0xf]  ;;  %v2073_v40 = vld [vmem:[%s1997_s25 + $0x2c] sm:$0xf] }
  0x14   : > { %v1635_v26 = vcombine.low %v403_v16, %v404_v17  ;;  %v1636_v27 = vcombine.low %v405_v18, %v406_v19  ;;  %v410_v34 = vadd.bf16 %v378_v30, %v2051_v29  ;;  %v2076_v41 = vld [vmem:[%s1997_s25 + $0x30] sm:$0xf]  ;;  %v2079_v42 = vld [vmem:[%s1997_s25 + $0x34] sm:$0xf]  ;;  %v411_v45 = vadd.bf16 %v379_v36, %v2070_v39  ;;  %v2094_v49 = vld [vmem:[%s1997_s25 + $0x38] sm:$0xf] }
  0x15   : > { %1812 = vmatprep.mubr.msk.bf16.mxu0 %vm529_vm0, %v1634_v22  ;;  %v1637_v35 = vcombine.low %v407_v31, %v408_v32  ;;  %v412_v46 = vadd.bf16 %v380_v37, %v2073_v40  ;;  %v413_v47 = vadd.bf16 %v381_v43, %v2076_v41  ;;  %v414_v48 = vadd.bf16 %v382_v44, %v2079_v42  ;;  %v2097_v50 = vld [vmem:[%s1997_s25 + $0x3c] sm:$0xf]  ;;  %v2106_v54 = vld [vmem:[%s1997_s25 + $0x40] sm:$0xf]  ;;  %v2109_v55 = vld [vmem:[%s1997_s25 + $0x44] sm:$0xf] }
  0x16   : > { %1813 = vmatmul.mubr.msk.bf16.vlgmr.msra.gmra.mrb[0].mxu0 %vm529_vm0, %v1635_v26  ;;  %v1638_v38 = vcombine.low %v409_v33, %v410_v34  ;;  %v415_v59 = vadd.bf16 %v383_v51, %v2094_v49  ;;  %v416_v60 = vadd.bf16 %v384_v52, %v2097_v50  ;;  %v417_v61 = vadd.bf16 %v385_v56, %v2106_v54  ;;  %v2124_v63 = vld [vmem:[%s1997_s25 + $0x48] sm:$0xf]  ;;  %v2127_v0 = vld [vmem:[%s1997_s25 + $0x4c] sm:$0xf]  ;;  %v2136_v4 = vld [vmem:[%s1997_s25 + $0x50] sm:$0xf] }
  0x17   : > { %1816 = vmatprep.mubr.msk.bf16.mxu0 %vm529_vm0, %v1636_v27  ;;  %v1639_v53 = vcombine.low %v411_v45, %v412_v46  ;;  %v1640_v58 = vcombine.low %v413_v47, %v414_v48  ;;  %v418_v62 = vadd.bf16 %v386_v57, %v2109_v55  ;;  %v388_v2 = vld [vmem:[%s2555_s1 + $0x4c] sm:$0xf]  ;;  %v2139_v5 = vld [vmem:[%s1997_s25 + $0x54] sm:$0xf]  ;;  %v389_v6 = vld [vmem:[%s2555_s1 + $0x50] sm:$0xf]  ;;  %v419_v12 = vadd.bf16 %v387_v1, %v2124_v63 }
  0x18   : > { %v1641_v3 = vcombine.low %v415_v59, %v416_v60  ;;  %v390_v7 = vld [vmem:[%s2555_s1 + $0x54] sm:$0xf]  ;;  %v420_v16 = vadd.bf16 %v388_v2, %v2127_v0  ;;  %v421_v17 = vadd.bf16 %v389_v6, %v2136_v4  ;;  %v2154_v20 = vld [vmem:[%s1997_s25 + $0x58] sm:$0xf]  ;;  %v2157_v21 = vld [vmem:[%s1997_s25 + $0x5c] sm:$0xf] }
  0x19   : > { %v1642_v11 = vcombine.low %v417_v61, %v418_v62  ;;  %v422_v18 = vadd.bf16 %v390_v7, %v2139_v5  ;;  %v391_v25 = vld [vmem:[%s2555_s1 + $0x58] sm:$0xf]  ;;  %v392_v26 = vld [vmem:[%s2555_s1 + $0x5c] sm:$0xf]  ;;  %v2166_v27 = vld [vmem:[%s1997_s25 + $0x60] sm:$0xf] }
  0x1a   : > { %v1643_v19 = vcombine.low %v419_v12, %v420_v16  ;;  %v2169_v30 = vld [vmem:[%s1997_s25 + $0x64] sm:$0xf]  ;;  %v393_v31 = vld [vmem:[%s2555_s1 + $0x60] sm:$0xf]  ;;  %v423_v33 = vadd.bf16 %v391_v25, %v2154_v20  ;;  %v424_v34 = vadd.bf16 %v392_v26, %v2157_v21  ;;  %v2187_v43 = vld [vmem:[%s1997_s25 + $0x6c] sm:$0xf] }
  0x1b   : > { %v1644_v22 = vcombine.low %v421_v17, %v422_v18  ;;  %v394_v32 = vld [vmem:[%s2555_s1 + $0x64] sm:$0xf]  ;;  %v395_v45 = vld [vmem:[%s2555_s1 + $0x68] sm:$0xf]  ;;  %v396_v46 = vld [vmem:[%s2555_s1 + $0x6c] sm:$0xf] }
  0x1c   : > { %v426_v36 = vadd.bf16 %v394_v32, %v2169_v30  ;;  %v1645_v37 = vcombine.low %v423_v33, %v424_v34  ;;  %v2196_v47 = vld [vmem:[%s1997_s25 + $0x70] sm:$0xf]  ;;  %v2199_v48 = vld [vmem:[%s1997_s25 + $0x74] sm:$0xf]  ;;  %v428_v56 = vadd.bf16 %v396_v46, %v2187_v43  ;;  %v2214_v60 = vld [vmem:[%s1997_s25 + $0x78] sm:$0xf] }
  0x1d   : > { %v397_v51 = vld [vmem:[%s2555_s1 + $0x70] sm:$0xf]  ;;  %v398_v52 = vld [vmem:[%s2555_s1 + $0x74] sm:$0xf]  ;;  %v2217_v62 = vld [vmem:[%s1997_s25 + $0x7c] sm:$0xf] }
  0x1e   : > { %1817 = vmatmul.mubr.msk.bf16.gmra.mrb[4].mxu0 %vm529_vm0, %v1637_v35  ;;  %v425_v35 = vadd.bf16 %v393_v31, %v2166_v27  ;;  %v429_v57 = vadd.bf16 %v397_v51, %v2196_v47  ;;  %v399_v1 = vld [vmem:[%s2555_s1 + $0x78] sm:$0xf]  ;;  %v400_v2 = vld [vmem:[%s2555_s1 + $0x7c] sm:$0xf]  ;;  %v1894_v12 = vld [vmem:[%s2560_s6 + $0x8] sm:$0xff]  }
  0x1f   : > { %1820 = vmatprep.mubr.msk.bf16.mxu0 %vm529_vm0, %v1638_v38  ;;  %v2184_v38 = vld [vmem:[%s1997_s25 + $0x68] sm:$0xf]  ;;  %v432_v6 = vadd.bf16 %v400_v2, %v2217_v62  ;;  %v2239_v16 = vld [vmem:[%s2558_s4] ss:$0 sm:$0xff] }
  0x20   : > { %v1646_v44 = vcombine.low %v425_v35, %v426_v36  ;;  %v2244_v18 = vld [vmem:[%s2559_s5] ss:$0 sm:$0xff] }
  0x26   : > { %1821 = vmatmul.mubr.msk.bf16.gmra.mrb[8].mxu0 %vm529_vm0, %v1639_v53  ;;  %v427_v53 = vadd.bf16 %v395_v45, %v2184_v38 }
  0x27   : > { %1824 = vmatprep.mubr.msk.bf16.mxu0 %vm529_vm0, %v1640_v58  ;;  %v430_v58 = vadd.bf16 %v398_v52, %v2199_v48 }
  0x28   : > { %v1647_v59 = vcombine.low %v427_v53, %v428_v56  ;;  %v1895_v53 = vld [vmem:[%s2556_s2] sm:$0xff]  }
  0x29   : > { %v1648_v61 = vcombine.low %v429_v57, %v430_v58  ;;  %v1890_v57 = vld [vmem:[%s2556_s2 + $0x8] sm:$0xff]  }
  0x2e   : > { %1825 = vmatmul.mubr.msk.bf16.gmra.mrb[12].mxu0 %vm529_vm0, %v1641_v3  ;;  %v431_v3 = vadd.bf16 %v399_v1, %v2214_v60 }
  0x2f   : > { %1828 = vmatprep.mubr.msk.bf16.mxu0 %vm529_vm0, %v1642_v11  ;;  %v1891_v11 = vld [vmem:[%s2560_s6] sm:$0xff]  }
  0x30   : > { %v1649_v7 = vcombine.low %v431_v3, %v432_v6  ;;  %1844 = vmatprep.subr.bf16.mxu1 %v1891_v11 }
  0x31   : > { %1845 = vmatpush3.bf16.msra.mxu1 %v1891_v11 }
  0x32   : > { %1846 = vmatprep.subr.bf16.mxu1 %v1894_v12 }
  0x35   : > { %1847 = vmatpush3.bf16.msra.mxu1 %v1894_v12 }
  0x36   : > { %1829 = vmatmul.mubr.msk.bf16.gmra.mrb[16].mxu0 %vm529_vm0, %v1643_v19 }
  0x37   : > { %1832 = vmatprep.mubr.msk.bf16.mxu0 %vm529_vm0, %v1644_v22 }
  0x3e   : > { %1833 = vmatmul.mubr.msk.bf16.gmra.mrb[20].mxu0 %vm529_vm0, %v1645_v37 }
  0x3f   : > { %1836 = vmatprep.mubr.msk.bf16.mxu0 %vm529_vm0, %v1646_v44 }
  0x46   : > { %1837 = vmatmul.mubr.msk.bf16.gmra.mrb[24].mxu0 %vm529_vm0, %v1647_v59 }
  0x47   : > { %1840 = vmatprep.mubr.msk.bf16.mxu0 %vm529_vm0, %v1648_v61 }
  0x4e   : > { %1841 = vmatmul.mubr.msk.bf16.gmra.mrb[28].mxu0 %vm529_vm0, %v1649_v7 }
  0xe9   : > { %v1814_v17 = vpop.f32.mrb[0].mxu0 }
  0xea   : > { %v748_v19 = vmul.f32 %v1814_v17, %v2239_v16  ;;  %v612_v22 = vpop.f32.mrb[1].mxu0 }
  0xeb   : > { %v746_v25 = vmul.f32 %v2239_v16, %v612_v22  ;;  %v1815_v26 = vpop.f32.mrb[2].mxu0 }
  0xec   : > { %v787_v31 = vadd.f32 %v2244_v18, %v748_v19  ;;  %v749_v32 = vmul.f32 %v1815_v26, %v2239_v16  ;;  %v615_v33 = vpop.f32.mrb[3].mxu0 }
  0xed   : > { %v785_v34 = vadd.f32 %v2244_v18, %v746_v25  ;;  %v747_v35 = vmul.f32 %v2239_v16, %v615_v33 }
  0xee   : > { %v788_v36 = vadd.f32 %v2244_v18, %v749_v32  ;;  %v819_v44 = vmax.f32 %v787_v31, 0.0 }
  0xef   : > { %v786_v37 = vadd.f32 %v2244_v18, %v747_v35  ;;  %v817_v46 = vmax.f32 %v785_v34, 0.0  ;;  %v1893_v34 = vld [vmem:[%s2556_s2 + $0x10] sm:$0xff]  }
  0xf0   : > { %v820_v45 = vmax.f32 %v788_v36, 0.0 }
  0xf1   : > { %v818_v51 = vmax.f32 %v786_v37, 0.0  ;;  %v1818_v52 = vpop.f32.mrb[4].mxu0  ;;  %v1892_v37 = vld [vmem:[%s2556_s2 + $0x18] sm:$0xff]  }
  0xf2   : > { %v850_v56 = vpack.c.bf16 %v820_v45, %v819_v44  ;;  %v752_v58 = vmul.f32 %v1818_v52, %v2239_v16  ;;  %v628_v59 = vpop.f32.mrb[5].mxu0 }
  0xf3   : > { %v750_v61 = vmul.f32 %v2239_v16, %v628_v59  ;;  %v1819_v1 = vpop.f32.mrb[6].mxu0  ;;  %v849_v2 = vpack.c.bf16 %v818_v51, %v817_v46 }
  0xf4   : > { %v791_v3 = vadd.f32 %v2244_v18, %v752_v58  ;;  %v753_v6 = vmul.f32 %v1819_v1, %v2239_v16  ;;  %v631_v7 = vpop.f32.mrb[7].mxu0  ;;  %v994_v19 = vadd.bf16 %v1890_v57, %v850_v56 }
  0xf5   : > { %v789_v11 = vadd.f32 %v2244_v18, %v750_v61  ;;  %v751_v12 = vmul.f32 %v2239_v16, %v631_v7  ;;  %v993_v17 = vadd.bf16 %v1895_v53, %v849_v2 }
  0xf6   : > { %v792_v22 = vadd.f32 %v2244_v18, %v753_v6  ;;  %v823_v26 = vmax.f32 %v791_v3, 0.0 }
  0xf7   : > { %v790_v25 = vadd.f32 %v2244_v18, %v751_v12  ;;  %1848 = vmatprep.mubr.msk.bf16.mxu1 %vm529_vm0, %v993_v17  ;;  %v821_v32 = vmax.f32 %v789_v11, 0.0  ;;  %v1897_v17 = vld [vmem:[%s2556_s2 + $0x20] sm:$0xff]  }
  0xf8   : > { %v824_v31 = vmax.f32 %v792_v22, 0.0  ;;  %1849 = vmatmul.mubr.msk.bf16.vlgmr.msra.gmra.mrb[0].mxu1 %vm529_vm0, %v994_v19 }
  0xf9   : > { %v822_v33 = vmax.f32 %v790_v25, 0.0  ;;  %v1822_v35 = vpop.f32.mrb[8].mxu0  ;;  %v1896_v25 = vld [vmem:[%s2556_s2 + $0x28] sm:$0xff]  }
  0xfa   : > { %v852_v36 = vpack.c.bf16 %v824_v31, %v823_v26  ;;  %v756_v44 = vmul.f32 %v1822_v35, %v2239_v16  ;;  %v644_v45 = vpop.f32.mrb[9].mxu0 }
  0xfb   : > { %v851_v46 = vpack.c.bf16 %v822_v33, %v821_v32  ;;  %v754_v51 = vmul.f32 %v2239_v16, %v644_v45  ;;  %v1823_v52 = vpop.f32.mrb[10].mxu0 }
  0xfc   : > { %v795_v53 = vadd.f32 %v2244_v18, %v756_v44  ;;  %v757_v56 = vmul.f32 %v1823_v52, %v2239_v16  ;;  %v647_v57 = vpop.f32.mrb[11].mxu0  ;;  %v996_v1 = vadd.bf16 %v1892_v37, %v852_v36 }
  0xfd   : > { %v995_v58 = vadd.bf16 %v1893_v34, %v851_v46  ;;  %v793_v59 = vadd.f32 %v2244_v18, %v754_v51  ;;  %v755_v61 = vmul.f32 %v2239_v16, %v647_v57 }
  0xfe   : > { %v796_v2 = vadd.f32 %v2244_v18, %v757_v56  ;;  %v827_v6 = vmax.f32 %v795_v53, 0.0 }
  0xff   : > { %v794_v3 = vadd.f32 %v2244_v18, %v755_v61  ;;  %1852 = vmatprep.mubr.msk.bf16.mxu1 %vm529_vm0, %v995_v58  ;;  %v825_v11 = vmax.f32 %v793_v59, 0.0  ;;  %v1899_v61 = vld [vmem:[%s2556_s2 + $0x30] sm:$0xff]  }
 0x100   : > { %v828_v7 = vmax.f32 %v796_v2, 0.0  ;;  %1853 = vmatmul.mubr.msk.bf16.gmra.mrb[4].mxu1 %vm529_vm0, %v996_v1 }
 0x101   : > { %v826_v12 = vmax.f32 %v794_v3, 0.0  ;;  %v1826_v19 = vpop.f32.mrb[12].mxu0  ;;  %v1898_v3 = vld [vmem:[%s2556_s2 + $0x38] sm:$0xff]  }
 0x102   : > { %v854_v22 = vpack.c.bf16 %v828_v7, %v827_v6  ;;  %v760_v26 = vmul.f32 %v1826_v19, %v2239_v16  ;;  %v660_v31 = vpop.f32.mrb[13].mxu0 }
 0x103   : > { %v853_v32 = vpack.c.bf16 %v826_v12, %v825_v11  ;;  %v758_v33 = vmul.f32 %v2239_v16, %v660_v31  ;;  %v1827_v34 = vpop.f32.mrb[14].mxu0 }
 0x104   : > { %v799_v35 = vadd.f32 %v2244_v18, %v760_v26  ;;  %v761_v36 = vmul.f32 %v1827_v34, %v2239_v16  ;;  %v663_v37 = vpop.f32.mrb[15].mxu0  ;;  %v998_v51 = vadd.bf16 %v1896_v25, %v854_v22 }
 0x105   : > { %v997_v44 = vadd.bf16 %v1897_v17, %v853_v32  ;;  %v797_v45 = vadd.f32 %v2244_v18, %v758_v33  ;;  %v759_v46 = vmul.f32 %v2239_v16, %v663_v37 }
 0x106   : > { %v800_v52 = vadd.f32 %v2244_v18, %v761_v36  ;;  %v831_v56 = vmax.f32 %v799_v35, 0.0 }
 0x107   : > { %v798_v53 = vadd.f32 %v2244_v18, %v759_v46  ;;  %1856 = vmatprep.mubr.msk.bf16.mxu1 %vm529_vm0, %v997_v44  ;;  %v829_v58 = vmax.f32 %v797_v45, 0.0  ;;  %v1901_v46 = vld [vmem:[%s2556_s2 + $0x40] sm:$0xff]  }
 0x108   : > { %v832_v57 = vmax.f32 %v800_v52, 0.0  ;;  %1857 = vmatmul.mubr.msk.bf16.gmra.mrb[8].mxu1 %vm529_vm0, %v998_v51 }
 0x109   : > { %v830_v59 = vmax.f32 %v798_v53, 0.0  ;;  %v1830_v1 = vpop.f32.mrb[16].mxu0  ;;  %v1900_v53 = vld [vmem:[%s2556_s2 + $0x48] sm:$0xff]  }
 0x10a   : > { %v856_v2 = vpack.c.bf16 %v832_v57, %v831_v56  ;;  %v764_v6 = vmul.f32 %v1830_v1, %v2239_v16  ;;  %v676_v7 = vpop.f32.mrb[17].mxu0 }
 0x10b   : > { %v855_v11 = vpack.c.bf16 %v830_v59, %v829_v58  ;;  %v762_v12 = vmul.f32 %v2239_v16, %v676_v7  ;;  %v1831_v17 = vpop.f32.mrb[18].mxu0 }
 0x10c   : > { %v803_v19 = vadd.f32 %v2244_v18, %v764_v6  ;;  %v765_v22 = vmul.f32 %v1831_v17, %v2239_v16  ;;  %v679_v25 = vpop.f32.mrb[19].mxu0  ;;  %v1000_v33 = vadd.bf16 %v1898_v3, %v856_v2 }
 0x10d   : > { %v999_v26 = vadd.bf16 %v1899_v61, %v855_v11  ;;  %v801_v31 = vadd.f32 %v2244_v18, %v762_v12  ;;  %v763_v32 = vmul.f32 %v2239_v16, %v679_v25 }
 0x10e   : > { %v804_v34 = vadd.f32 %v2244_v18, %v765_v22  ;;  %v835_v36 = vmax.f32 %v803_v19, 0.0 }
 0x10f   : > { %v802_v35 = vadd.f32 %v2244_v18, %v763_v32  ;;  %1860 = vmatprep.mubr.msk.bf16.mxu1 %vm529_vm0, %v999_v26  ;;  %v833_v44 = vmax.f32 %v801_v31, 0.0  ;;  %v1903_v32 = vld [vmem:[%s2556_s2 + $0x50] sm:$0xff]  }
 0x110   : > { %v836_v37 = vmax.f32 %v804_v34, 0.0  ;;  %1861 = vmatmul.mubr.msk.bf16.gmra.mrb[12].mxu1 %vm529_vm0, %v1000_v33 }
 0x111   : > { %v834_v45 = vmax.f32 %v802_v35, 0.0  ;;  %v1834_v51 = vpop.f32.mrb[20].mxu0  ;;  %v1902_v35 = vld [vmem:[%s2556_s2 + $0x58] sm:$0xff]  }
 0x112   : > { %v858_v52 = vpack.c.bf16 %v836_v37, %v835_v36  ;;  %v768_v56 = vmul.f32 %v1834_v51, %v2239_v16  ;;  %v692_v57 = vpop.f32.mrb[21].mxu0 }
 0x113   : > { %v857_v58 = vpack.c.bf16 %v834_v45, %v833_v44  ;;  %v766_v59 = vmul.f32 %v2239_v16, %v692_v57  ;;  %v1835_v61 = vpop.f32.mrb[22].mxu0 }
 0x114   : > { %v807_v1 = vadd.f32 %v2244_v18, %v768_v56  ;;  %v769_v2 = vmul.f32 %v1835_v61, %v2239_v16  ;;  %v695_v3 = vpop.f32.mrb[23].mxu0  ;;  %v1002_v12 = vadd.bf16 %v1900_v53, %v858_v52 }
 0x115   : > { %v1001_v6 = vadd.bf16 %v1901_v46, %v857_v58  ;;  %v805_v7 = vadd.f32 %v2244_v18, %v766_v59  ;;  %v767_v11 = vmul.f32 %v2239_v16, %v695_v3 }
 0x116   : > { %v808_v17 = vadd.f32 %v2244_v18, %v769_v2  ;;  %v839_v22 = vmax.f32 %v807_v1, 0.0 }
 0x117   : > { %v806_v19 = vadd.f32 %v2244_v18, %v767_v11  ;;  %1864 = vmatprep.mubr.msk.bf16.mxu1 %vm529_vm0, %v1001_v6  ;;  %v837_v26 = vmax.f32 %v805_v7, 0.0  ;;  %v1905_v11 = vld [vmem:[%s2556_s2 + $0x60] sm:$0xff]  }
 0x118   : > { %v840_v25 = vmax.f32 %v808_v17, 0.0  ;;  %1865 = vmatmul.mubr.msk.bf16.gmra.mrb[16].mxu1 %vm529_vm0, %v1002_v12 }
 0x119   : > { %v838_v31 = vmax.f32 %v806_v19, 0.0  ;;  %v1838_v33 = vpop.f32.mrb[24].mxu0  ;;  %v1904_v19 = vld [vmem:[%s2556_s2 + $0x68] sm:$0xff]  }
 0x11a   : > { %v860_v34 = vpack.c.bf16 %v840_v25, %v839_v22  ;;  %v772_v36 = vmul.f32 %v1838_v33, %v2239_v16  ;;  %v708_v37 = vpop.f32.mrb[25].mxu0 }
 0x11b   : > { %v859_v44 = vpack.c.bf16 %v838_v31, %v837_v26  ;;  %v770_v45 = vmul.f32 %v2239_v16, %v708_v37  ;;  %v1839_v46 = vpop.f32.mrb[26].mxu0 }
 0x11c   : > { %v811_v51 = vadd.f32 %v2244_v18, %v772_v36  ;;  %v773_v52 = vmul.f32 %v1839_v46, %v2239_v16  ;;  %v711_v53 = vpop.f32.mrb[27].mxu0  ;;  %v1004_v59 = vadd.bf16 %v1902_v35, %v860_v34 }
 0x11d   : > { %v1003_v56 = vadd.bf16 %v1903_v32, %v859_v44  ;;  %v809_v57 = vadd.f32 %v2244_v18, %v770_v45  ;;  %v771_v58 = vmul.f32 %v2239_v16, %v711_v53 }
 0x11e   : > { %v812_v61 = vadd.f32 %v2244_v18, %v773_v52  ;;  %v843_v2 = vmax.f32 %v811_v51, 0.0 }
 0x11f   : > { %v810_v1 = vadd.f32 %v2244_v18, %v771_v58  ;;  %1868 = vmatprep.mubr.msk.bf16.mxu1 %vm529_vm0, %v1003_v56  ;;  %v841_v6 = vmax.f32 %v809_v57, 0.0  ;;  %v1907_v58 = vld [vmem:[%s2556_s2 + $0x70] sm:$0xff]  }
 0x120   : > { %v844_v3 = vmax.f32 %v812_v61, 0.0  ;;  %1869 = vmatmul.mubr.msk.bf16.gmra.mrb[20].mxu1 %vm529_vm0, %v1004_v59 }
 0x121   : > { %v842_v7 = vmax.f32 %v810_v1, 0.0  ;;  %v1842_v12 = vpop.f32.mrb[28].mxu0 }
 0x122   : > { %v862_v17 = vpack.c.bf16 %v844_v3, %v843_v2  ;;  %v776_v22 = vmul.f32 %v1842_v12, %v2239_v16  ;;  %v724_v25 = vpop.f32.mrb[29].mxu0  ;;  %v2377_v2 = vld [vmem:[%s2561_s7] ss:$0 sm:$0xff] }
 0x123   : > { %v861_v26 = vpack.c.bf16 %v842_v7, %v841_v6  ;;  %v774_v31 = vmul.f32 %v2239_v16, %v724_v25  ;;  %v1843_v32 = vpop.f32.mrb[30].mxu0  ;;  %v2382_v6 = vld [vmem:[%s2562_s8] ss:$0 sm:$0xff] }
 0x124   : > { %v815_v33 = vadd.f32 %v2244_v18, %v776_v22  ;;  %v777_v34 = vmul.f32 %v1843_v32, %v2239_v16  ;;  %v727_v35 = vpop.f32.mrb[31].mxu0  ;;  %v1006_v45 = vadd.bf16 %v1904_v19, %v862_v17  ;;  %v1312_v17 = vunpack.c.l.bf16 %v2009_v8 }
 0x125   : > { %v1005_v36 = vadd.bf16 %v1905_v11, %v861_v26  ;;  %v813_v37 = vadd.f32 %v2244_v18, %v774_v31  ;;  %v775_v44 = vmul.f32 %v2239_v16, %v727_v35  ;;  %v1906_v16 = vld [vmem:[%s2556_s2 + $0x78] sm:$0xff]   ;;  %v1314_v11 = vunpack.c.l.bf16 %v2015_v10 }
 0x126   : > { %v816_v46 = vadd.f32 %v2244_v18, %v777_v34  ;;  %v847_v52 = vmax.f32 %v815_v33, 0.0  ;;  %v1315_v31 = vunpack.c.l.bf16 %v2020_v13  ;;  %v1313_v33 = vunpack.c.l.bf16 %v2012_v9 }
 0x127   : > { %v814_v51 = vadd.f32 %v2244_v18, %v775_v44  ;;  %1872 = vmatprep.mubr.msk.bf16.mxu1 %vm529_vm0, %v1005_v36  ;;  %v845_v56 = vmax.f32 %v813_v37, 0.0 }
 0x128   : > { %v848_v53 = vmax.f32 %v816_v46, 0.0  ;;  %1873 = vmatmul.mubr.msk.bf16.gmra.mrb[24].mxu1 %vm529_vm0, %v1006_v45 }
 0x129   : > { %v846_v57 = vmax.f32 %v814_v51, 0.0 }
 0x12a   : > { %v864_v59 = vpack.c.bf16 %v848_v53, %v847_v52 }
 0x12b   : > { %v863_v61 = vpack.c.bf16 %v846_v57, %v845_v56  ;;  %v1318_v56 = vunpack.c.l.bf16 %v2039_v23 }
 0x12c   : > { %v1008_v18 = vadd.bf16 %v1906_v16, %v864_v59 }
 0x12d   : > { %v1007_v1 = vadd.bf16 %v1907_v58, %v863_v61  ;;  %v1316_v61 = vunpack.c.l.bf16 %v2023_v14  ;;  %v1317_v14 = vunpack.c.l.bf16 %v2026_v15 }
 0x12f   : > { %1876 = vmatprep.mubr.msk.bf16.mxu1 %vm529_vm0, %v1007_v1 }
 0x130   : > { %1877 = vmatmul.mubr.msk.bf16.gmra.mrb[28].mxu1 %vm529_vm0, %v1008_v18 }
 0x1cb   : > { %v1850_v3 = vpop.f32.mrb[0].mxu1 }
 0x1cc   : > { %v1243_v7 = vmul.f32 %v1850_v3, %v2377_v2  ;;  %v1107_v12 = vpop.f32.mrb[1].mxu1 }
 0x1cd   : > { %v1241_v19 = vmul.f32 %v2377_v2, %v1107_v12  ;;  %v1851_v22 = vpop.f32.mrb[2].mxu1 }
 0x1ce   : > { %v1282_v25 = vadd.f32 %v2382_v6, %v1243_v7  ;;  %v1244_v26 = vmul.f32 %v1851_v22, %v2377_v2  ;;  %v1110_v32 = vpop.f32.mrb[3].mxu1 }
 0x1cf   : > { %v1280_v34 = vadd.f32 %v2382_v6, %v1241_v19  ;;  %v1242_v10 = vmul.f32 %v2377_v2, %v1110_v32 }
 0x1d0   : > { %v1346_v35 = vadd.f32 %v1314_v11, %v1282_v25  ;;  %v1283_v8 = vadd.f32 %v2382_v6, %v1244_v26  ;;  %v1319_v11 = vunpack.c.l.bf16 %v2042_v24 }
 0x1d1   : > { %v1344_v36 = vadd.f32 %v1312_v17, %v1280_v34  ;;  %v1281_v37 = vadd.f32 %v2382_v6, %v1242_v10 }
 0x1d2   : > { %v1378_v44 = vmax.f32 %v1346_v35, 0.0  ;;  %v1347_v45 = vadd.f32 %v1315_v31, %v1283_v8 }
 0x1d3   : > { %v1376_v9 = vmax.f32 %v1344_v36, 0.0  ;;  %v1345_v13 = vadd.f32 %v1313_v33, %v1281_v37  ;;  %v1854_v46 = vpop.f32.mrb[4].mxu1  ;;  %v1322_v36 = vunpack.c.l.bf16 %v2070_v39 }
 0x1d4   : > { %v1742_v51 = vpack.c.bf16 %v1378_v44, %v1378_v44  ;;  %v1379_v52 = vmax.f32 %v1347_v45, 0.0  ;;  %v1247_v53 = vmul.f32 %v1854_v46, %v2377_v2  ;;  %v1123_v57 = vpop.f32.mrb[5].mxu1 }
 0x1d5   : > { %v1740_v58 = vpack.c.bf16 %v1376_v9, %v1376_v9  ;;  %v1377_v59 = vmax.f32 %v1345_v13, 0.0  ;;  %v1245_v16 = vmul.f32 %v2377_v2, %v1123_v57  ;;  %v1855_v1 = vpop.f32.mrb[6].mxu1  ;;  %v1320_v13 = vunpack.c.l.bf16 %v2048_v28 }
 0x1d6   : > { %1539 = vst.msk [vmem:[%s2401_s24 + $0x8] sm:$0xf] %vm1536_vm1, %v1742_v51  ;;  %v1743_v18 = vpack.c.bf16 %v1379_v52, %v1379_v52  ;;  %v1286_v3 = vadd.f32 %v2382_v6, %v1247_v53  ;;  %v1248_v7 = vmul.f32 %v1855_v1, %v2377_v2  ;;  %v1126_v23 = vpop.f32.mrb[7].mxu1  ;;  %v1321_v28 = vunpack.c.l.bf16 %v2051_v29 }
 0x1d7   : > { %1537 = vst.msk [vmem:[%s2401_s24] sm:$0xf] %vm1536_vm1, %v1740_v58  ;;  %v1741_v12 = vpack.c.bf16 %v1377_v59, %v1377_v59  ;;  %v1284_v17 = vadd.f32 %v2382_v6, %v1245_v16  ;;  %v1246_v19 = vmul.f32 %v2377_v2, %v1126_v23 }
 0x1d8   : > { %1540 = vst.msk [vmem:[%s2401_s24 + $0xc] sm:$0xf] %vm1536_vm1, %v1743_v18  ;;  %v1350_v22 = vadd.f32 %v1318_v56, %v1286_v3  ;;  %v1287_v25 = vadd.f32 %v2382_v6, %v1248_v7  ;;  %v1323_v56 = vunpack.c.l.bf16 %v2073_v40 }
 0x1d9   : > { %1538 = vst.msk [vmem:[%s2401_s24 + $0x4] sm:$0xf] %vm1536_vm1, %v1741_v12  ;;  %v1348_v26 = vadd.f32 %v1316_v61, %v1284_v17  ;;  %v1285_v24 = vadd.f32 %v2382_v6, %v1246_v19  ;;  %v1326_v19 = vunpack.c.l.bf16 %v2094_v49 }
 0x1da   : > { %v1382_v31 = vmax.f32 %v1350_v22, 0.0  ;;  %v1351_v32 = vadd.f32 %v1319_v11, %v1287_v25 }
 0x1db   : > { %v1380_v33 = vmax.f32 %v1348_v26, 0.0  ;;  %v1349_v34 = vadd.f32 %v1317_v14, %v1285_v24  ;;  %v1858_v10 = vpop.f32.mrb[8].mxu1  ;;  %v1324_v24 = vunpack.c.l.bf16 %v2076_v41  ;;  %v1325_v41 = vunpack.c.l.bf16 %v2079_v42 }
 0x1dc   : > { %v1746_v35 = vpack.c.bf16 %v1382_v31, %v1382_v31  ;;  %v1383_v8 = vmax.f32 %v1351_v32, 0.0  ;;  %v1251_v15 = vmul.f32 %v1858_v10, %v2377_v2  ;;  %v1139_v37 = vpop.f32.mrb[9].mxu1  ;;  %v1327_v10 = vunpack.c.l.bf16 %v2097_v50 }
 0x1dd   : > { %v1744_v44 = vpack.c.bf16 %v1380_v33, %v1380_v33  ;;  %v1381_v45 = vmax.f32 %v1349_v34, 0.0  ;;  %v1249_v9 = vmul.f32 %v2377_v2, %v1139_v37  ;;  %v1859_v46 = vpop.f32.mrb[10].mxu1 }
 0x1de   : > { %1543 = vst.msk [vmem:[%s2401_s24 + $0x18] sm:$0xf] %vm1536_vm1, %v1746_v35  ;;  %v1747_v51 = vpack.c.bf16 %v1383_v8, %v1383_v8  ;;  %v1290_v52 = vadd.f32 %v2382_v6, %v1251_v15  ;;  %v1252_v53 = vmul.f32 %v1859_v46, %v2377_v2  ;;  %v1142_v39 = vpop.f32.mrb[11].mxu1 }
 0x1df   : > { %1541 = vst.msk [vmem:[%s2401_s24 + $0x10] sm:$0xf] %vm1536_vm1, %v1744_v44  ;;  %v1745_v57 = vpack.c.bf16 %v1381_v45, %v1381_v45  ;;  %v1288_v58 = vadd.f32 %v2382_v6, %v1249_v9  ;;  %v1250_v59 = vmul.f32 %v2377_v2, %v1142_v39 }
 0x1e0   : > { %1544 = vst.msk [vmem:[%s2401_s24 + $0x1c] sm:$0xf] %vm1536_vm1, %v1747_v51  ;;  %v1354_v16 = vadd.f32 %v1322_v36, %v1290_v52  ;;  %v1291_v61 = vadd.f32 %v2382_v6, %v1252_v53 }
 0x1e1   : > { %1542 = vst.msk [vmem:[%s2401_s24 + $0x14] sm:$0xf] %vm1536_vm1, %v1745_v57  ;;  %v1352_v1 = vadd.f32 %v1320_v13, %v1288_v58  ;;  %v1289_v40 = vadd.f32 %v2382_v6, %v1250_v59 }
 0x1e2   : > { %v1386_v18 = vmax.f32 %v1354_v16, 0.0  ;;  %v1355_v3 = vadd.f32 %v1323_v56, %v1291_v61  ;;  %v1330_v56 = vunpack.c.l.bf16 %v2124_v63 }
 0x1e3   : > { %v1384_v7 = vmax.f32 %v1352_v1, 0.0  ;;  %v1353_v11 = vadd.f32 %v1321_v28, %v1289_v40  ;;  %v1862_v23 = vpop.f32.mrb[12].mxu1  ;;  %v1328_v28 = vunpack.c.l.bf16 %v2106_v54  ;;  %v1329_v54 = vunpack.c.l.bf16 %v2109_v55 }
 0x1e4   : > { %v1750_v12 = vpack.c.bf16 %v1386_v18, %v1386_v18  ;;  %v1387_v17 = vmax.f32 %v1355_v3, 0.0  ;;  %v1255_v29 = vmul.f32 %v1862_v23, %v2377_v2  ;;  %v1155_v14 = vpop.f32.mrb[13].mxu1  ;;  %v1331_v18 = vunpack.c.l.bf16 %v2127_v0 }
 0x1e5   : > { %v1748_v22 = vpack.c.bf16 %v1384_v7, %v1384_v7  ;;  %v1385_v25 = vmax.f32 %v1353_v11, 0.0  ;;  %v1253_v26 = vmul.f32 %v2377_v2, %v1155_v14  ;;  %v1863_v31 = vpop.f32.mrb[14].mxu1 }
 0x1e6   : > { %1547 = vst.msk [vmem:[%s2401_s24 + $0x28] sm:$0xf] %vm1536_vm1, %v1750_v12  ;;  %v1751_v32 = vpack.c.bf16 %v1387_v17, %v1387_v17  ;;  %v1294_v33 = vadd.f32 %v2382_v6, %v1255_v29  ;;  %v1256_v34 = vmul.f32 %v1863_v31, %v2377_v2  ;;  %v1158_v49 = vpop.f32.mrb[15].mxu1  ;;  %v1334_v31 = vunpack.c.l.bf16 %v2154_v20 }
 0x1e7   : > { %1545 = vst.msk [vmem:[%s2401_s24 + $0x20] sm:$0xf] %vm1536_vm1, %v1748_v22  ;;  %v1749_v35 = vpack.c.bf16 %v1385_v25, %v1385_v25  ;;  %v1292_v8 = vadd.f32 %v2382_v6, %v1253_v26  ;;  %v1254_v15 = vmul.f32 %v2377_v2, %v1158_v49  ;;  %v1332_v49 = vunpack.c.l.bf16 %v2136_v4 }
 0x1e8   : > { %1548 = vst.msk [vmem:[%s2401_s24 + $0x2c] sm:$0xf] %vm1536_vm1, %v1751_v32  ;;  %v1358_v36 = vadd.f32 %v1326_v19, %v1294_v33  ;;  %v1295_v37 = vadd.f32 %v2382_v6, %v1256_v34  ;;  %v1333_v4 = vunpack.c.l.bf16 %v2139_v5 }
 0x1e9   : > { %1546 = vst.msk [vmem:[%s2401_s24 + $0x24] sm:$0xf] %vm1536_vm1, %v1749_v35  ;;  %v1356_v44 = vadd.f32 %v1324_v24, %v1292_v8  ;;  %v1293_v50 = vadd.f32 %v2382_v6, %v1254_v15 }
 0x1ea   : > { %v1390_v45 = vmax.f32 %v1358_v36, 0.0  ;;  %v1359_v9 = vadd.f32 %v1327_v10, %v1295_v37  ;;  %v1335_v36 = vunpack.c.l.bf16 %v2157_v21 }
 0x1eb   : > { %v1388_v13 = vmax.f32 %v1356_v44, 0.0  ;;  %v1357_v46 = vadd.f32 %v1325_v41, %v1293_v50  ;;  %v1866_v51 = vpop.f32.mrb[16].mxu1 }
 0x1ec   : > { %v1754_v52 = vpack.c.bf16 %v1390_v45, %v1390_v45  ;;  %v1391_v53 = vmax.f32 %v1359_v9, 0.0  ;;  %v1259_v42 = vmul.f32 %v1866_v51, %v2377_v2  ;;  %v1171_v39 = vpop.f32.mrb[17].mxu1 }
 0x1ed   : > { %v1752_v57 = vpack.c.bf16 %v1388_v13, %v1388_v13  ;;  %v1389_v58 = vmax.f32 %v1357_v46, 0.0  ;;  %v1257_v59 = vmul.f32 %v2377_v2, %v1171_v39  ;;  %v1867_v16 = vpop.f32.mrb[18].mxu1 }
 0x1ee   : > { %1551 = vst.msk [vmem:[%s2401_s24 + $0x38] sm:$0xf] %vm1536_vm1, %v1754_v52  ;;  %v1755_v61 = vpack.c.bf16 %v1391_v53, %v1391_v53  ;;  %v1298_v1 = vadd.f32 %v2382_v6, %v1259_v42  ;;  %v1260_v40 = vmul.f32 %v1867_v16, %v2377_v2  ;;  %v1174_v63 = vpop.f32.mrb[19].mxu1 }
 0x1ef   : > { %1549 = vst.msk [vmem:[%s2401_s24 + $0x30] sm:$0xf] %vm1536_vm1, %v1752_v57  ;;  %v1753_v3 = vpack.c.bf16 %v1389_v58, %v1389_v58  ;;  %v1296_v7 = vadd.f32 %v2382_v6, %v1257_v59  ;;  %v1258_v11 = vmul.f32 %v2377_v2, %v1174_v63  ;;  %v1338_v57 = vunpack.c.l.bf16 %v2184_v38 }
 0x1f0   : > { %1552 = vst.msk [vmem:[%s2401_s24 + $0x3c] sm:$0xf] %vm1536_vm1, %v1755_v61  ;;  %v1362_v23 = vadd.f32 %v1330_v56, %v1298_v1  ;;  %v1299_v12 = vadd.f32 %v2382_v6, %v1260_v40  ;;  %v1336_v61 = vunpack.c.l.bf16 %v2166_v27  ;;  %v1337_v27 = vunpack.c.l.bf16 %v2169_v30 }
 0x1f1   : > { %1550 = vst.msk [vmem:[%s2401_s24 + $0x34] sm:$0xf] %vm1536_vm1, %v1753_v3  ;;  %v1360_v17 = vadd.f32 %v1328_v28, %v1296_v7  ;;  %v1297_v0 = vadd.f32 %v2382_v6, %v1258_v11  ;;  %v1339_v3 = vunpack.c.l.bf16 %v2187_v43 }
 0x1f2   : > { %v1394_v29 = vmax.f32 %v1362_v23, 0.0  ;;  %v1363_v19 = vadd.f32 %v1331_v18, %v1299_v12 }
 0x1f3   : > { %v1392_v14 = vmax.f32 %v1360_v17, 0.0  ;;  %v1361_v22 = vadd.f32 %v1329_v54, %v1297_v0  ;;  %v1870_v25 = vpop.f32.mrb[20].mxu1 }
 0x1f4   : > { %v1758_v26 = vpack.c.bf16 %v1394_v29, %v1394_v29  ;;  %v1395_v24 = vmax.f32 %v1363_v19, 0.0  ;;  %v1263_v55 = vmul.f32 %v1870_v25, %v2377_v2  ;;  %v1187_v32 = vpop.f32.mrb[21].mxu1 }
 0x1f5   : > { %v1756_v33 = vpack.c.bf16 %v1392_v14, %v1392_v14  ;;  %v1393_v34 = vmax.f32 %v1361_v22, 0.0  ;;  %v1261_v10 = vmul.f32 %v2377_v2, %v1187_v32  ;;  %v1871_v35 = vpop.f32.mrb[22].mxu1 }
 0x1f6   : > { %1555 = vst.msk [vmem:[%s2401_s24 + $0x48] sm:$0xf] %vm1536_vm1, %v1758_v26  ;;  %v1759_v8 = vpack.c.bf16 %v1395_v24, %v1395_v24  ;;  %v1302_v15 = vadd.f32 %v2382_v6, %v1263_v55  ;;  %v1264_v41 = vmul.f32 %v1871_v35, %v2377_v2  ;;  %v1190_v20 = vpop.f32.mrb[23].mxu1  ;;  %v1342_v24 = vunpack.c.l.bf16 %v2214_v60 }
 0x1f7   : > { %1553 = vst.msk [vmem:[%s2401_s24 + $0x40] sm:$0xf] %vm1536_vm1, %v1756_v33  ;;  %v1757_v37 = vpack.c.bf16 %v1393_v34, %v1393_v34  ;;  %v1300_v44 = vadd.f32 %v2382_v6, %v1261_v10  ;;  %v1262_v50 = vmul.f32 %v2377_v2, %v1190_v20  ;;  %v1340_v34 = vunpack.c.l.bf16 %v2196_v47 }
 0x1f8   : > { %1556 = vst.msk [vmem:[%s2401_s24 + $0x4c] sm:$0xf] %vm1536_vm1, %v1759_v8  ;;  %v1366_v45 = vadd.f32 %v1334_v31, %v1302_v15  ;;  %v1303_v9 = vadd.f32 %v2382_v6, %v1264_v41  ;;  %v1343_v15 = vunpack.c.l.bf16 %v2217_v62  ;;  %v1341_v47 = vunpack.c.l.bf16 %v2199_v48 }
 0x1f9   : > { %1554 = vst.msk [vmem:[%s2401_s24 + $0x44] sm:$0xf] %vm1536_vm1, %v1757_v37  ;;  %v1364_v13 = vadd.f32 %v1332_v49, %v1300_v44  ;;  %v1301_v21 = vadd.f32 %v2382_v6, %v1262_v50 }
 0x1fa   : > { %v1398_v46 = vmax.f32 %v1366_v45, 0.0  ;;  %v1367_v51 = vadd.f32 %v1335_v36, %v1303_v9 }
 0x1fb   : > { %v1396_v52 = vmax.f32 %v1364_v13, 0.0  ;;  %v1365_v53 = vadd.f32 %v1333_v4, %v1301_v21  ;;  %v1874_v42 = vpop.f32.mrb[24].mxu1 }
 0x1fc   : > { %v1762_v56 = vpack.c.bf16 %v1398_v46, %v1398_v46  ;;  %v1399_v39 = vmax.f32 %v1367_v51, 0.0  ;;  %v1267_v5 = vmul.f32 %v1874_v42, %v2377_v2  ;;  %v1203_v58 = vpop.f32.mrb[25].mxu1 }
 0x1fd   : > { %v1760_v59 = vpack.c.bf16 %v1396_v52, %v1396_v52  ;;  %v1397_v28 = vmax.f32 %v1365_v53, 0.0  ;;  %v1265_v16 = vmul.f32 %v2377_v2, %v1203_v58  ;;  %v1875_v1 = vpop.f32.mrb[26].mxu1 }
 0x1fe   : > { %1559 = vst.msk [vmem:[%s2401_s24 + $0x58] sm:$0xf] %vm1536_vm1, %v1762_v56  ;;  %v1763_v40 = vpack.c.bf16 %v1399_v39, %v1399_v39  ;;  %v1306_v18 = vadd.f32 %v2382_v6, %v1267_v5  ;;  %v1268_v63 = vmul.f32 %v1875_v1, %v2377_v2  ;;  %v1206_v38 = vpop.f32.mrb[27].mxu1 }
 0x1ff   : > { %1557 = vst.msk [vmem:[%s2401_s24 + $0x50] sm:$0xf] %vm1536_vm1, %v1760_v59  ;;  %v1761_v7 = vpack.c.bf16 %v1397_v28, %v1397_v28  ;;  %v1304_v11 = vadd.f32 %v2382_v6, %v1265_v16  ;;  %v1266_v54 = vmul.f32 %v2377_v2, %v1206_v38 }
 0x200   : > { %1560 = vst.msk [vmem:[%s2401_s24 + $0x5c] sm:$0xf] %vm1536_vm1, %v1763_v40  ;;  %v1370_v23 = vadd.f32 %v1338_v57, %v1306_v18  ;;  %v1307_v12 = vadd.f32 %v2382_v6, %v1268_v63 }
 0x201   : > { %1558 = vst.msk [vmem:[%s2401_s24 + $0x54] sm:$0xf] %vm1536_vm1, %v1761_v7  ;;  %v1368_v17 = vadd.f32 %v1336_v61, %v1304_v11  ;;  %v1305_v43 = vadd.f32 %v2382_v6, %v1266_v54 }
 0x202   : > { %v1402_v0 = vmax.f32 %v1370_v23, 0.0  ;;  %v1371_v29 = vadd.f32 %v1339_v3, %v1307_v12 }
 0x203   : > { %v1400_v19 = vmax.f32 %v1368_v17, 0.0  ;;  %v1369_v14 = vadd.f32 %v1337_v27, %v1305_v43  ;;  %v1878_v22 = vpop.f32.mrb[28].mxu1 }
 0x204   : > { %v1766_v25 = vpack.c.bf16 %v1402_v0, %v1402_v0  ;;  %v1403_v26 = vmax.f32 %v1371_v29, 0.0  ;;  %v1271_v30 = vmul.f32 %v1878_v22, %v2377_v2  ;;  %v1219_v55 = vpop.f32.mrb[29].mxu1 }
 0x205   : > { %v1764_v31 = vpack.c.bf16 %v1400_v19, %v1400_v19  ;;  %v1401_v32 = vmax.f32 %v1369_v14, 0.0  ;;  %v1269_v33 = vmul.f32 %v2377_v2, %v1219_v55  ;;  %v1879_v10 = vpop.f32.mrb[30].mxu1 }
 0x206   : > { %1563 = vst.msk [vmem:[%s2401_s24 + $0x68] sm:$0xf] %vm1536_vm1, %v1766_v25  ;;  %v1767_v49 = vpack.c.bf16 %v1403_v26, %v1403_v26  ;;  %v1310_v35 = vadd.f32 %v2382_v6, %v1271_v30  ;;  %v1272_v8 = vmul.f32 %v1879_v10, %v2377_v2  ;;  %v1222_v60 = vpop.f32.mrb[31].mxu1 }
 0x207   : > { %1561 = vst.msk [vmem:[%s2401_s24 + $0x60] sm:$0xf] %vm1536_vm1, %v1764_v31  ;;  %v1765_v41 = vpack.c.bf16 %v1401_v32, %v1401_v32  ;;  %v1308_v36 = vadd.f32 %v2382_v6, %v1269_v33  ;;  %v1270_v20 = vmul.f32 %v2377_v2, %v1222_v60 }
 0x208   : > { %1564 = vst.msk [vmem:[%s2401_s24 + $0x6c] sm:$0xf] %vm1536_vm1, %v1767_v49  ;;  %v1374_v37 = vadd.f32 %v1342_v24, %v1310_v35  ;;  %v1311_v44 = vadd.f32 %v2382_v6, %v1272_v8 }
 0x209   : > { %1562 = vst.msk [vmem:[%s2401_s24 + $0x64] sm:$0xf] %vm1536_vm1, %v1765_v41  ;;  %v1372_v62 = vadd.f32 %v1340_v34, %v1308_v36  ;;  %v1309_v50 = vadd.f32 %v2382_v6, %v1270_v20 }
 0x20a   : > { %v1406_v4 = vmax.f32 %v1374_v37, 0.0  ;;  %v1375_v45 = vadd.f32 %v1343_v15, %v1311_v44 }
 0x20b   : > { %v1404_v9 = vmax.f32 %v1372_v62, 0.0  ;;  %v1373_v2 = vadd.f32 %v1341_v47, %v1309_v50 }
 0x20c   : > { %v1770_v13 = vpack.c.bf16 %v1406_v4, %v1406_v4  ;;  %v1407_v21 = vmax.f32 %v1375_v45, 0.0 }
 0x20d   : > { %v1768_v48 = vpack.c.bf16 %v1404_v9, %v1404_v9  ;;  %v1405_v46 = vmax.f32 %v1373_v2, 0.0 }
 0x20e   : > { %1567 = vst.msk [vmem:[%s2401_s24 + $0x78] sm:$0xf] %vm1536_vm1, %v1770_v13  ;;  %v1771_v51 = vpack.c.bf16 %v1407_v21, %v1407_v21 }
 0x20f   : > { %1565 = vst.msk [vmem:[%s2401_s24 + $0x70] sm:$0xf] %vm1536_vm1, %v1768_v48  ;;  %v1769_v52 = vpack.c.bf16 %v1405_v46, %v1405_v46 }
 0x210   : > { %1568 = vst.msk [vmem:[%s2401_s24 + $0x7c] sm:$0xf] %vm1536_vm1, %v1771_v51 }
 0x211   : > { %1566 = vst.msk [vmem:[%s2401_s24 + $0x74] sm:$0xf] %vm1536_vm1, %v1769_v52 }
 0x212 PF: > { %s19_s30 = sadd.s32 1, %s1914_s30  }
 0x213   : > { %p16_p4 = scmp.ge.s32.totalorder %s19_s30, 4  }
 0x215   :  { %18 = sbr.rel (!%p16_p4) target bundleno = 1 (0x1), region = 86 }

// kernel: perturbation_blocks_forward.3
= control target key start
LH: loop header
LB: loop body
LE: loop exit
PB: predicated region body
PF: predicated region fallthrough
CT: control target
= control target key end

     0   :  { %s1621_s21 = smov 0   ;;  %s1831_s0 = inlined_call_operand.vmem [shape: bf16[128,288], index: 0, kind: input, shape index: {}]   ;;  %s1832_s1 = inlined_call_operand.vmem [shape: bf16[128,32], index: 1, kind: input, shape index: {}]   ;;  %s1833_s2 = inlined_call_operand.vmem [shape: bf16[64,64], index: 2, kind: input, shape index: {}]   ;;  %s1834_s3 = inlined_call_operand.vmem [shape: bf16[288,64], index: 3, kind: input, shape index: {}]   ;;  %s1835_s4 = inlined_call_operand.vmem [shape: f32[1,64], index: 4, kind: input, shape index: {}]   ;;  %s1836_s5 = inlined_call_operand.vmem [shape: f32[1,64], index: 5, kind: input, shape index: {}]   ;;  %s1837_s6 = inlined_call_operand.vmem [shape: bf16[64,64], index: 6, kind: input, shape index: {}]   ;;  %s1838_s7 = inlined_call_operand.vmem [shape: f32[1,64], index: 7, kind: input, shape index: {}]   ;;  %s1839_s8 = inlined_call_operand.vmem [shape: f32[1,64], index: 8, kind: input, shape index: {}]   ;;  %s1840_s9 = inlined_call_operand.vmem [shape: bf16[32,64], index: 9, kind: input, shape index: {}]   ;;  %s1841_s10 = inlined_call_operand.vmem [shape: f32[1,64], index: 10, kind: input, shape index: {}]   ;;  %s1842_s11 = inlined_call_operand.vmem [shape: f32[1,64], index: 11, kind: input, shape index: {}]   ;;  %s1843_s12 = inlined_call_operand.vmem [shape: bf16[128,64], index: 12, kind: output, shape index: {}]  }
   0x1 LB: > { %s1300_s22 = sadd.s32 4294967295, %s1554_s21   ;;  %p1304_p0 = scmp.ge.s32.totalorder %s1554_s21, 1  ;;  %s1554_s21 = sphi %s1621_s21, %s22_s21  }
   0x2   : > { %p375_p1 = scmp.lt.s32.totalorder %s1554_s21, 3 }
   0x4   : > { %p376_p2 = pnand %p1304_p0, %p375_p1 }
   0x5   : > { %v1500_v0 = vld [vmem:[%s1834_s3 + $0x40] sm:$0xff] (!%p376_p2)   ;;  %s1305_s27 = sshll.u32 (!%p376_p2), %s1300_s22, 3  ;;  %v1502_v2 = vld [vmem:[%s1834_s3 + $0x48] sm:$0xff] (!%p376_p2)   ;;  %v1504_v4 = vld [vmem:[%s1834_s3 + $0x50] sm:$0xff] (!%p376_p2)   ;;  %vm663_vm0 = vcmask (!%p376_p2), 261120   ;;  %vm916_vm1 = vcmask (!%p376_p2), 523264  }
   0x6   : > { %379 = sbr.rel (%p376_p2) target bundleno = 533 (0x215), region = 68  ;;  %v1501_v1 = vld [vmem:[%s1834_s3] sm:$0xff] (!%p376_p2)   ;;  %1391 = vmatprep.subr.bf16.mxu0 (!%p376_p2), %v1500_v0  ;;  %v1503_v3 = vld [vmem:[%s1834_s3 + $0x8] sm:$0xff] (!%p376_p2)   ;;  %p424_p3 = scmp.lt.s32.totalorder (!%p376_p2), %s1305_s27, 15  ;;  %v1505_v5 = vld [vmem:[%s1834_s3 + $0x10] sm:$0xff] (!%p376_p2)   ;;  %vm1223_vm2 = vcmask (!%p376_p2), 519168  }
   0x7   : > { %1392 = vmatpush3.bf16.msra.mxu0 (!%p376_p2), %v1501_v1  ;;  %v1506_v6 = vld [vmem:[%s1834_s3 + $0x58] sm:$0xff] (!%p376_p2)   ;;  %v1508_v8 = vld [vmem:[%s1834_s3 + $0x60] sm:$0xff] (!%p376_p2)   ;;  %v1510_v11 = vld [vmem:[%s1834_s3 + $0x68] sm:$0xff] (!%p376_p2)  }
   0x8   : > { %1393 = vmatprep.subr.bf16.mxu0 (!%p376_p2), %v1502_v2  ;;  %v1507_v7 = vld [vmem:[%s1834_s3 + $0x18] sm:$0xff] (!%p376_p2)   ;;  %v1514_v9 = vld [vmem:[%s1834_s3 + $0x80] sm:$0xff] (!%p376_p2)   ;;  %v1511_v12 = vld [vmem:[%s1834_s3 + $0x28] sm:$0xff] (!%p376_p2)  }
   0x9   : > { %v1509_v10 = vld [vmem:[%s1834_s3 + $0x20] sm:$0xff] (!%p376_p2)   ;;  %1451 = vmatprep.subr.bf16.mxu1 (!%p376_p2), %v1514_v9  ;;  %v1517_v13 = vld [vmem:[%s1834_s3 + $0x88] sm:$0xff] (!%p376_p2)   ;;  %v1512_v14 = vld [vmem:[%s1834_s3 + $0x70] sm:$0xff] (!%p376_p2)  }
   0xa   : > { %1452 = vmatpush3.bf16.msra.mxu1 (!%p376_p2), %v1514_v9  ;;  %v1513_v18 = vld [vmem:[%s1834_s3 + $0x30] sm:$0xff] (!%p376_p2)   ;;  %v1515_v19 = vld [vmem:[%s1834_s3 + $0x78] sm:$0xff] (!%p376_p2)   ;;  %v1534_v30 = vld [vmem:[%s1837_s6] sm:$0xff] (!%p376_p2)  }
   0xb   : > { %1394 = vmatpush3.bf16.msra.mxu0 (!%p376_p2), %v1503_v3  ;;  %1453 = vmatprep.subr.bf16.mxu1 (!%p376_p2), %v1517_v13  ;;  %v1516_v21 = vld [vmem:[%s1834_s3 + $0x38] sm:$0xff] (!%p376_p2)   ;;  %v1536_v31 = vld [vmem:[%s1837_s6 + $0x8] sm:$0xff] (!%p376_p2)   ;;  %v1537_v32 = vld [vmem:[%s1837_s6 + $0x10] sm:$0xff] (!%p376_p2)  }
   0xc   : > { %1395 = vmatprep.subr.bf16.mxu0 (!%p376_p2), %v1504_v4  ;;  %v1539_v33 = vld [vmem:[%s1837_s6 + $0x18] sm:$0xff] (!%p376_p2)   ;;  %v1722_v34 = vld [vmem:[%s1840_s9] sm:$0xff] (!%p376_p2)  }
   0xd   : > { %s1845_s27 = smov (!%p424_p3, %s1305_s27), 15  ;;  %v1740_v48 = vld [vmem:[%s1835_s4] ss:$0 sm:$0xff] }
   0xe   : > { %s1491_s25 = smul.u32 12, %s1845_s27  ;;  %1454 = vmatpush3.bf16.msra.mxu1 %v1517_v13  ;;  %v1745_v51 = vld [vmem:[%s1836_s5] ss:$0 sm:$0xff] }
   0xf   : > { %1396 = vmatpush3.bf16.msra.mxu0 %v1505_v5  ;;  %1463 = vmatprep.subr.bf16.mxu1 %v1534_v30  ;;  %v1538_v2 = vld [vmem:[%s1833_s2] sm:$0xff]  }
  0x10   : > { %1397 = vmatprep.subr.bf16.mxu0 %v1506_v6  ;;  %s1671_s17 = scalar_lea.vmem %s1831_s0, %s1491_s25  ;;  %s1308_s25 = sshll.u32 %s1845_s27, 2 }
  0x11   : > { %v1520_v15 = vld [vmem:[%s1671_s17 + $0x4] ss:$12 sps:$4 sm:$0xff]   ;;  %v1521_v16 = vld [vmem:[%s1671_s17 + $0x8] ss:$12 sps:$4 sm:$0xff]   ;;  %v1522_v17 = vld [vmem:[%s1671_s17 + $0x20] ss:$12 sps:$4 sm:$0xff]   ;;  %s1731_s29 = scalar_lea.vmem %s1832_s1, %s1308_s25  ;;  %s1810_s22 = scalar_lea.vmem %s1843_s12, %s1308_s25 }
  0x12   : > { %708 = vmatprep.mubr.bf16.mxu0 %v1520_v15  ;;  %1455 = vmatprep.mubr.msk.bf16.mxu1 %vm663_vm0, %v1521_v16  ;;  %v1529_v20 = vld [vmem:[%s1671_s17 + $0x38] ss:$12 sps:$4 sm:$0xff]   ;;  %v1530_v22 = vld [vmem:[%s1671_s17 + $0x50] ss:$12 sps:$4 sm:$0xff]   ;;  %v1518_v23 = vld [vmem:[%s1671_s17] ss:$12 sps:$4 sm:$0xff]  }
  0x13   : > { %1398 = vmatpush3.bf16.msra.mxu0 %v1507_v7  ;;  %1456 = vmatmul.mubr.msk.bf16.vlgmr.msra.gmra.mrb[0].mxu1 %vm663_vm0, %v1522_v17  ;;  %v1523_v24 = vld [vmem:[%s1671_s17 + $0x1c] ss:$12 sps:$4 sm:$0xff]   ;;  %v1525_v25 = vld [vmem:[%s1671_s17 + $0x18] ss:$12 sps:$4 sm:$0xff]   ;;  %v1526_v26 = vld [vmem:[%s1671_s17 + $0x34] ss:$12 sps:$4 sm:$0xff]  }
  0x14   : > { %1399 = vmatprep.subr.bf16.mxu0 %v1508_v8  ;;  %1459 = vmatprep.mubr.msk.bf16.mxu1 %vm663_vm0, %v1529_v20  ;;  %v1528_v27 = vld [vmem:[%s1671_s17 + $0x30] ss:$12 sps:$4 sm:$0xff]   ;;  %v1531_v28 = vld [vmem:[%s1671_s17 + $0x4c] ss:$12 sps:$4 sm:$0xff]   ;;  %v1533_v29 = vld [vmem:[%s1671_s17 + $0x48] ss:$12 sps:$4 sm:$0xff]  }
  0x15   : > { %1464 = vmatpush3.bf16.msra.mxu1 %v1534_v30  ;;  %v1535_v17 = vld [vmem:[%s1833_s2 + $0x8] sm:$0xff]  }
  0x16   : > { %1465 = vmatprep.subr.bf16.mxu1 %v1536_v31 }
  0x17   : > { %1400 = vmatpush3.bf16.msra.mxu0 %v1509_v10 }
  0x18   : > { %1401 = vmatprep.subr.bf16.mxu0 %v1510_v11 }
  0x19   : > { %1466 = vmatpush3.bf16.msra.mxu1 %v1536_v31 }
  0x1a   : > { %1467 = vmatprep.subr.bf16.mxu1 %v1537_v32 }
  0x1b   : > { %1402 = vmatpush3.bf16.msra.mxu0 %v1511_v12  ;;  %1460 = vmatmul.mubr.msk.bf16.gmra.mrb[4].mxu1 %vm663_vm0, %v1530_v22 }
  0x1c   : > { %1403 = vmatprep.subr.bf16.mxu0 %v1512_v14 }
  0x1d   : > { %1468 = vmatpush3.bf16.msra.mxu1 %v1537_v32 }
  0x1e   : > { %1469 = vmatprep.subr.bf16.mxu1 %v1539_v33 }
  0x1f   : > { %1404 = vmatpush3.bf16.msra.mxu0 %v1513_v18 }
  0x20   : > { %1405 = vmatprep.subr.bf16.mxu0 %v1515_v19 }
  0x21   : > { %1470 = vmatpush3.bf16.msra.mxu1 %v1539_v33 }
  0x22   : > { %1479 = vmatprep.subr.bf16.mxu1 %v1722_v34 }
  0x23   : > { %1406 = vmatpush3.bf16.msra.mxu0 %v1516_v21 }
  0x26   : > { %709 = vmatmul.mubr.bf16.vlgmr.msra.gmra.mrb[0].mxu0 %v1518_v23 }
  0x27   : > { %716 = vmatprep.mubr.bf16.mxu0 %v1523_v24 }
  0x2e   : > { %717 = vmatmul.mubr.bf16.gmra.mrb[4].mxu0 %v1525_v25 }
  0x2f   : > { %724 = vmatprep.mubr.bf16.mxu0 %v1526_v26 }
  0x36   : > { %725 = vmatmul.mubr.bf16.gmra.mrb[8].mxu0 %v1528_v27  ;;  %v1542_v27 = vld [vmem:[%s1840_s9 + $0x8] sm:$0xff]  }
  0x37   : > { %732 = vmatprep.mubr.bf16.mxu0 %v1531_v28 }
  0x3e   : > { %733 = vmatmul.mubr.bf16.gmra.mrb[12].mxu0 %v1533_v29 }
  0xe6   : > { %v1457_v35 = vpop.f32.mrb[0].mxu1 }
  0xe7   : > { %v775_v36 = vpop.f32.mrb[1].mxu1 }
  0xe8   : > { %v1458_v37 = vpop.f32.mrb[2].mxu1 }
  0xe9   : > { %v778_v38 = vpop.f32.mrb[3].mxu1 }
  0xee   : > { %v1733_v39 = vpop.f32.mrb[4].mxu1 }
  0xef   : > { %v791_v40 = vpop.f32.mrb[5].mxu1 }
  0xf0   : > { %v1735_v42 = vpop.f32.mrb[6].mxu1 }
  0xf1   : > { %v794_v44 = vpop.f32.mrb[7].mxu1 }
  0xf9   : > { %v1407_v41 = vpop.f32.mrb[0].mxu0 }
  0xfa   : > { %v1408_v43 = vpop.f32.mrb[1].mxu0 }
  0xfb   : > { %v1409_v45 = vadd.f32 %v1408_v43, %v1407_v41  ;;  %v1410_v46 = vpop.f32.mrb[2].mxu0 }
  0xfc   : > { %v1411_v47 = vpop.f32.mrb[3].mxu0 }
  0xfd   : > { %v1412_v49 = vadd.f32 %v1411_v47, %v1410_v46  ;;  %v776_v50 = vadd.f32 %v1409_v45, %v775_v36 }
  0xff   : > { %v813_v52 = vmul.f32 %v1740_v48, %v776_v50  ;;  %v779_v53 = vadd.f32 %v1412_v49, %v778_v38  ;;  %v1541_v38 = vld [vmem:[%s1833_s2 + $0x10] sm:$0xff]   ;;  %v1543_v49 = vld [vmem:[%s1833_s2 + $0x18] sm:$0xff]  }
 0x101   : > { %v828_v54 = vadd.f32 %v1745_v51, %v813_v52  ;;  %v814_v55 = vmul.f32 %v1740_v48, %v779_v53  ;;  %v1413_v56 = vpop.f32.mrb[4].mxu0  ;;  %v1546_v53 = vld [vmem:[%s1731_s29 + $0x10] sm:$0xff]  }
 0x102   : > { %v1414_v57 = vpop.f32.mrb[5].mxu0 }
 0x103   : > { %v829_v58 = vadd.f32 %v1745_v51, %v814_v55  ;;  %v1415_v59 = vadd.f32 %v1414_v57, %v1413_v56  ;;  %v1416_v60 = vpop.f32.mrb[6].mxu0  ;;  %v836_v62 = vmax.f32 %v828_v54, 0.0 }
 0x104   : > { %v1417_v61 = vpop.f32.mrb[7].mxu0 }
 0x105   : > { %v837_v63 = vmax.f32 %v829_v58, 0.0  ;;  %v784_v0 = vadd.f32 %v1457_v35, %v1415_v59  ;;  %v1418_v1 = vadd.f32 %v1417_v61, %v1416_v60 }
 0x107   : > { %v844_v3 = vpack.c.bf16 %v837_v63, %v836_v62  ;;  %v815_v4 = vmul.f32 %v1740_v48, %v784_v0  ;;  %v787_v5 = vadd.f32 %v1458_v37, %v1418_v1  ;;  %v1359_v62 = vld [vmem:[%s1838_s7] ss:$0 sm:$0xff] }
 0x108   : > { %v1371_v63 = vld [vmem:[%s1841_s10] ss:$0 sm:$0xff] }
 0x109   : > { %v830_v6 = vadd.f32 %v1745_v51, %v815_v4  ;;  %v816_v7 = vmul.f32 %v1740_v48, %v787_v5  ;;  %v1419_v8 = vpop.f32.mrb[8].mxu0  ;;  %v880_v9 = vadd.bf16 %v1538_v2, %v844_v3  ;;  %v1360_v1 = vld [vmem:[%s1839_s8] ss:$0 sm:$0xff] }
 0x10a   : > { %v1420_v10 = vpop.f32.mrb[9].mxu0  ;;  %v1372_v4 = vld [vmem:[%s1842_s11] ss:$0 sm:$0xff] }
 0x10b   : > { %v831_v11 = vadd.f32 %v1745_v51, %v816_v7  ;;  %v1421_v12 = vadd.f32 %v1420_v10, %v1419_v8  ;;  %v1422_v13 = vpop.f32.mrb[10].mxu0  ;;  %1471 = vmatprep.mubr.msk.bf16.mxu1 %vm916_vm1, %v880_v9  ;;  %v838_v15 = vmax.f32 %v830_v6, 0.0 }
 0x10c   : > { %v1423_v14 = vpop.f32.mrb[11].mxu0 }
 0x10d   : > { %v839_v16 = vmax.f32 %v831_v11, 0.0  ;;  %v1424_v18 = vadd.f32 %v1423_v14, %v1422_v13  ;;  %v792_v19 = vadd.f32 %v1421_v12, %v791_v40 }
 0x10f   : > { %v845_v20 = vpack.c.bf16 %v839_v16, %v838_v15  ;;  %v817_v21 = vmul.f32 %v1740_v48, %v792_v19  ;;  %v795_v22 = vadd.f32 %v1424_v18, %v794_v44 }
 0x111   : > { %v881_v23 = vadd.bf16 %v1535_v17, %v845_v20  ;;  %v832_v24 = vadd.f32 %v1745_v51, %v817_v21  ;;  %v818_v25 = vmul.f32 %v1740_v48, %v795_v22  ;;  %v1425_v26 = vpop.f32.mrb[12].mxu0 }
 0x112   : > { %v1426_v28 = vpop.f32.mrb[13].mxu0 }
 0x113   : > { %v833_v29 = vadd.f32 %v1745_v51, %v818_v25  ;;  %v1427_v30 = vadd.f32 %v1426_v28, %v1425_v26  ;;  %v1428_v31 = vpop.f32.mrb[14].mxu0  ;;  %1472 = vmatmul.mubr.msk.bf16.vlgmr.msra.gmra.mrb[8].mxu1 %vm916_vm1, %v881_v23  ;;  %v840_v33 = vmax.f32 %v832_v24, 0.0 }
 0x114   : > { %v1429_v32 = vpop.f32.mrb[15].mxu0  ;;  %1480 = vmatpush3.bf16.msra.mxu1 %v1722_v34 }
 0x115   : > { %v841_v35 = vmax.f32 %v833_v29, 0.0  ;;  %v800_v36 = vadd.f32 %v1733_v39, %v1427_v30  ;;  %v1430_v37 = vadd.f32 %v1429_v32, %v1428_v31  ;;  %1481 = vmatprep.subr.bf16.mxu1 %v1542_v27 }
 0x117   : > { %v846_v40 = vpack.c.bf16 %v841_v35, %v840_v33  ;;  %v819_v41 = vmul.f32 %v1740_v48, %v800_v36  ;;  %v803_v43 = vadd.f32 %v1735_v42, %v1430_v37  ;;  %v1544_v42 = vld [vmem:[%s1731_s29] sm:$0xff]  }
 0x118   : > { %1482 = vmatpush3.bf16.msra.mxu1 %v1542_v27 }
 0x119   : > { %v834_v34 = vadd.f32 %v1745_v51, %v819_v41  ;;  %v820_v44 = vmul.f32 %v1740_v48, %v803_v43  ;;  %v882_v39 = vadd.bf16 %v1541_v38, %v846_v40  ;;  %v1545_v48 = vld [vmem:[%s1731_s29 + $0x8] sm:$0xff]  }
 0x11b   : > { %v835_v45 = vadd.f32 %v1745_v51, %v820_v44  ;;  %1475 = vmatprep.mubr.msk.bf16.mxu1 %vm916_vm1, %v882_v39  ;;  %v842_v46 = vmax.f32 %v834_v34, 0.0  ;;  %v1547_v51 = vld [vmem:[%s1731_s29 + $0x18] sm:$0xff]  }
 0x11d   : > { %v843_v47 = vmax.f32 %v835_v45, 0.0 }
 0x11f   : > { %v847_v50 = vpack.c.bf16 %v843_v47, %v842_v46 }
 0x121   : > { %v883_v52 = vadd.bf16 %v1543_v49, %v847_v50 }
 0x123   : > { %1476 = vmatmul.mubr.msk.bf16.gmra.mrb[12].mxu1 %vm916_vm1, %v883_v52 }
 0x124   : > { %1483 = vmatprep.mubr.msk.bf16.mxu1 %vm663_vm0, %v1544_v42 }
 0x12b   : > { %1484 = vmatmul.mubr.msk.bf16.vlgmr.msra.gmra.mrb[16].mxu1 %vm663_vm0, %v1545_v48 }
 0x12c   : > { %1487 = vmatprep.mubr.msk.bf16.mxu1 %vm663_vm0, %v1546_v53 }
 0x133   : > { %1488 = vmatmul.mubr.msk.bf16.gmra.mrb[20].mxu1 %vm663_vm0, %v1547_v51 }
 0x1e6   : > { %v1473_v54 = vpop.f32.mrb[8].mxu1 }
 0x1e7   : > { %v963_v55 = vpop.f32.mrb[9].mxu1  ;;  %v1003_v0 = vmul.f32 %v1473_v54, %v1359_v62 }
 0x1e8   : > { %v1474_v56 = vpop.f32.mrb[10].mxu1  ;;  %v1001_v2 = vmul.f32 %v1359_v62, %v963_v55 }
 0x1e9   : > { %v966_v57 = vpop.f32.mrb[11].mxu1  ;;  %v1004_v5 = vmul.f32 %v1474_v56, %v1359_v62  ;;  %v1018_v11 = vadd.f32 %v1360_v1, %v1003_v0 }
 0x1ea   : > { %v1002_v8 = vmul.f32 %v1359_v62, %v966_v57  ;;  %v1016_v15 = vadd.f32 %v1360_v1, %v1001_v2 }
 0x1eb   : > { %v1019_v18 = vadd.f32 %v1360_v1, %v1004_v5 }
 0x1ec   : > { %v1017_v21 = vadd.f32 %v1360_v1, %v1002_v8 }
 0x1f6   : > { %v1477_v58 = vpop.f32.mrb[12].mxu1 }
 0x1f7   : > { %v979_v59 = vpop.f32.mrb[13].mxu1  ;;  %v1007_v24 = vmul.f32 %v1477_v58, %v1359_v62 }
 0x1f8   : > { %v1478_v60 = vpop.f32.mrb[14].mxu1  ;;  %v1005_v27 = vmul.f32 %v1359_v62, %v979_v59 }
 0x1f9   : > { %v982_v61 = vpop.f32.mrb[15].mxu1  ;;  %v1008_v31 = vmul.f32 %v1478_v60, %v1359_v62  ;;  %v1022_v34 = vadd.f32 %v1360_v1, %v1007_v24 }
 0x1fa   : > { %v1006_v37 = vmul.f32 %v1359_v62, %v982_v61  ;;  %v1020_v47 = vadd.f32 %v1360_v1, %v1005_v27 }
 0x1fb   : > { %v1023_v52 = vadd.f32 %v1360_v1, %v1008_v31 }
 0x1fc   : > { %v1021_v51 = vadd.f32 %v1360_v1, %v1006_v37 }
 0x1fe   : > { %v1485_v3 = vpop.f32.mrb[16].mxu1 }
 0x1ff   : > { %v1154_v6 = vmul.f32 %v1485_v3, %v1371_v63  ;;  %v1114_v7 = vpop.f32.mrb[17].mxu1 }
 0x200   : > { %v1152_v9 = vmul.f32 %v1371_v63, %v1114_v7  ;;  %v1486_v10 = vpop.f32.mrb[18].mxu1 }
 0x201   : > { %v1169_v12 = vadd.f32 %v1372_v4, %v1154_v6  ;;  %v1155_v13 = vmul.f32 %v1486_v10, %v1371_v63  ;;  %v1117_v14 = vpop.f32.mrb[19].mxu1 }
 0x202   : > { %v1167_v16 = vadd.f32 %v1372_v4, %v1152_v9  ;;  %v1153_v17 = vmul.f32 %v1371_v63, %v1117_v14 }
 0x203   : > { %v1177_v19 = vadd.f32 %v1169_v12, %v1018_v11  ;;  %v1170_v20 = vadd.f32 %v1372_v4, %v1155_v13 }
 0x204   : > { %v1175_v22 = vadd.f32 %v1167_v16, %v1016_v15  ;;  %v1168_v23 = vadd.f32 %v1372_v4, %v1153_v17 }
 0x205   : > { %v1185_v25 = vmax.f32 %v1177_v19, 0.0  ;;  %v1178_v26 = vadd.f32 %v1170_v20, %v1019_v18 }
 0x206   : > { %v1183_v28 = vmax.f32 %v1175_v22, 0.0  ;;  %v1176_v29 = vadd.f32 %v1168_v23, %v1017_v21  ;;  %v1489_v30 = vpop.f32.mrb[20].mxu1 }
 0x207   : > { %v1385_v32 = vpack.c.bf16 %v1185_v25, %v1185_v25  ;;  %v1186_v33 = vmax.f32 %v1178_v26, 0.0  ;;  %v1158_v35 = vmul.f32 %v1489_v30, %v1371_v63  ;;  %v1130_v36 = vpop.f32.mrb[21].mxu1 }
 0x208   : > { %v1383_v38 = vpack.c.bf16 %v1183_v28, %v1183_v28  ;;  %v1184_v40 = vmax.f32 %v1176_v29, 0.0  ;;  %v1156_v41 = vmul.f32 %v1371_v63, %v1130_v36  ;;  %v1490_v43 = vpop.f32.mrb[22].mxu1 }
 0x209   : > { %1226 = vst.msk [vmem:[%s1810_s22 + $0x8] sm:$0xf] %vm1223_vm2, %v1385_v32  ;;  %v1386_v44 = vpack.c.bf16 %v1186_v33, %v1186_v33  ;;  %v1173_v39 = vadd.f32 %v1372_v4, %v1158_v35  ;;  %v1159_v45 = vmul.f32 %v1490_v43, %v1371_v63  ;;  %v1133_v46 = vpop.f32.mrb[23].mxu1 }
 0x20a   : > { %1224 = vst.msk [vmem:[%s1810_s22] sm:$0xf] %vm1223_vm2, %v1383_v38  ;;  %v1384_v49 = vpack.c.bf16 %v1184_v40, %v1184_v40  ;;  %v1171_v50 = vadd.f32 %v1372_v4, %v1156_v41  ;;  %v1157_v42 = vmul.f32 %v1371_v63, %v1133_v46 }
 0x20b   : > { %1227 = vst.msk [vmem:[%s1810_s22 + $0xc] sm:$0xf] %vm1223_vm2, %v1386_v44  ;;  %v1181_v48 = vadd.f32 %v1173_v39, %v1022_v34  ;;  %v1174_v53 = vadd.f32 %v1372_v4, %v1159_v45 }
 0x20c   : > { %1225 = vst.msk [vmem:[%s1810_s22 + $0x4] sm:$0xf] %vm1223_vm2, %v1384_v49  ;;  %v1179_v54 = vadd.f32 %v1171_v50, %v1020_v47  ;;  %v1172_v55 = vadd.f32 %v1372_v4, %v1157_v42 }
 0x20d   : > { %v1189_v56 = vmax.f32 %v1181_v48, 0.0  ;;  %v1182_v57 = vadd.f32 %v1174_v53, %v1023_v52 }
 0x20e   : > { %v1187_v58 = vmax.f32 %v1179_v54, 0.0  ;;  %v1180_v59 = vadd.f32 %v1172_v55, %v1021_v51 }
 0x20f   : > { %v1389_v60 = vpack.c.bf16 %v1189_v56, %v1189_v56  ;;  %v1190_v61 = vmax.f32 %v1182_v57, 0.0 }
 0x210   : > { %v1387_v62 = vpack.c.bf16 %v1187_v58, %v1187_v58  ;;  %v1188_v63 = vmax.f32 %v1180_v59, 0.0 }
 0x211   : > { %1230 = vst.msk [vmem:[%s1810_s22 + $0x18] sm:$0xf] %vm1223_vm2, %v1389_v60  ;;  %v1390_v0 = vpack.c.bf16 %v1190_v61, %v1190_v61 }
 0x212   : > { %1228 = vst.msk [vmem:[%s1810_s22 + $0x10] sm:$0xf] %vm1223_vm2, %v1387_v62  ;;  %v1388_v1 = vpack.c.bf16 %v1188_v63, %v1188_v63 }
 0x213   : > { %1231 = vst.msk [vmem:[%s1810_s22 + $0x1c] sm:$0xf] %vm1223_vm2, %v1390_v0 }
 0x214   : > { %1229 = vst.msk [vmem:[%s1810_s22 + $0x14] sm:$0xf] %vm1223_vm2, %v1388_v1 }
 0x215 PF: > { %s22_s21 = sadd.s32 1, %s1554_s21  }
 0x216   : > { %p19_p4 = scmp.ge.s32.totalorder %s22_s21, 4  }
 0x218   :  { %21 = sbr.rel (!%p19_p4) target bundleno = 1 (0x1), region = 101 }

</bundles_post_ra>
